<compile_context>
chip_gen: v7x
topology: tpu7x:2x2x1
jax: 0.10.0
libtpu: 0.0.40
codegen_flags: <defaults>
</compile_context>

<pallas_src>
import functools
import math

import jax
import jax.numpy as jnp
import numpy as np
from jax import lax
from jax.experimental import pallas as pl
from jax.experimental.pallas import tpu as pltpu


# ----------------------------------------------------------------------------
# Fused kernel: GCN context (+ first residual) -> 4x [3x3 conv + BN + ReLU]
# (+ final residual). One grid step == `nb` images, everything lives in VMEM.
# Activation layout: [C, HW] (channels on sublanes, spatial on lanes).
# ----------------------------------------------------------------------------
def _fused_encoder_kernel(
    x_ref, masks_ref, wm_ref, w1_ref, w2_ref, vecs_ref,
    cw0_ref, cw1_ref, cw2_ref, cw3_ref,
    o_ref,
    act_ref, xcol_ref,
    *, H, W, C, out_c, P, offs, nb):
  HW = H * W
  f32 = jnp.float32

  # Static slices of the stacked small column-vector parameters (segments 8-aligned).
  o_b1, o_lng, o_lnb, o_b2, o_s0, o_s1, o_s2, o_s3 = offs
  b1 = vecs_ref[o_b1:o_b1 + P, :]
  lng = vecs_ref[o_lng:o_lng + P, :]
  lnb = vecs_ref[o_lnb:o_lnb + P, :]
  b2 = vecs_ref[o_b2:o_b2 + C, :]
  shifts = (vecs_ref[o_s0:o_s0 + out_c, :], vecs_ref[o_s1:o_s1 + out_c, :],
            vecs_ref[o_s2:o_s2 + out_c, :], vecs_ref[o_s3:o_s3 + C, :])

  # kh-major tap order == host-side weight flatten order.
  taps = [(dh, dw) for dh in (-1, 0, 1) for dw in (-1, 0, 1)]

  # Hoisted once per grid step: JAX does not CSE broadcast_in_dim, so broadcasting the
  # border mask inside every conv's tap loop would emit 32+ sublane broadcasts.
  tap_mask = [None] * 9
  for t_idx, (dh, dw) in enumerate(taps):
    if (dh, dw) != (0, 0):
      tap_mask[t_idx] = jnp.broadcast_to(masks_ref[t_idx:t_idx + 1, :], (C, HW))

  conv_w = (cw0_ref, cw1_ref, cw2_ref, cw3_ref)
  conv_cin = (C, out_c, out_c, out_c)
  conv_cout = (out_c, out_c, out_c, C)

  for b in range(nb):                                   # static unroll over images in block
    x = x_ref[b]                                        # [C, HW]

    # ---------------- GCN context block + first residual ----------------
    # 1x1 "mask" conv (C -> 1) on the MXU; its bias is dropped (softmax shift-invariant).
    logits = jnp.dot(wm_ref[...], x, preferred_element_type=f32)            # [1, HW]
    logits = logits - jnp.max(logits, axis=-1, keepdims=True)
    e = jnp.exp(logits)
    m = e * pl.reciprocal(jnp.sum(e, axis=-1, keepdims=True), approx=True)  # [1, HW]
    # context pooling: ctx[c] = sum_hw x[c, hw] * m[hw]
    ctx = jnp.sum(x * m, axis=-1, keepdims=True)                            # [C, 1]
    # channel_add_conv: 1x1 conv -> LayerNorm(P) -> ReLU -> 1x1 conv
    t = jnp.dot(w1_ref[...], ctx, preferred_element_type=f32) + b1          # [P, 1]
    mu = jnp.mean(t, axis=0, keepdims=True)
    var = jnp.mean((t - mu) * (t - mu), axis=0, keepdims=True)
    t = (t - mu) * lax.rsqrt(var + 1e-5) * lng + lnb
    t = jnp.maximum(t, 0.0)
    term = jnp.dot(w2_ref[...], t, preferred_element_type=f32) + b2         # [C, 1]
    # src + dropout1(gcn(src)) == 2*src + term   (dropout is identity at inference)
    act_ref[...] = 2.0 * x + term                                           # [C, HW]

    # ---------------- channel attention: 4x [conv3x3 + BN + ReLU] ----------------
    for ci in range(4):
      cin, cout = conv_cin[ci], conv_cout[ci]
      cur = act_ref[0:cin, :]                           # [cin, HW]
      # im2col into VMEM scratch: row block t holds the (dh,dw)-shifted, masked input.
      for t_idx, (dh, dw) in enumerate(taps):
        off = dh * W + dw
        if off == 0:
          val = cur
        else:
          val = pltpu.roll(cur, (-off) % HW, 1) * tap_mask[t_idx][0:cin, :]
        xcol_ref[t_idx * cin:(t_idx + 1) * cin, :] = val
      col = xcol_ref[0:9 * cin, :]                      # [9*cin, HW]
      # BN scale is folded into the weights on the host; shift kept additive.
      y = jnp.dot(conv_w[ci][...], col, preferred_element_type=f32)         # [cout, HW]
      y = jnp.maximum(y + shifts[ci], 0.0)
      if ci < 3:
        act_ref[0:cout, :] = y
      else:
        o_ref[b] = y + x                                # final residual with original input


def _make_tap_masks(H, W):
  """[16, HW] f32 validity masks (rows 0..8 used) for the 9 conv taps (zero padding)."""
  hw = H * W
  h = np.arange(hw) // W
  w = np.arange(hw) % W
  masks = np.zeros((16, hw), np.float32)
  t = 0
  for dh in (-1, 0, 1):
    for dw in (-1, 0, 1):
      valid = (h + dh >= 0) & (h + dh < H) & (w + dw >= 0) & (w + dw < W)
      masks[t] = valid.astype(np.float32)
      t += 1
  return jnp.asarray(masks)


def _stack_vectors(vectors):
  """Stack 1-D params into one [total, 1] column; each segment start is 8-aligned."""
  segs, offs, pos = [], [], 0
  for v in vectors:
    v = np.asarray(v, np.float32).reshape(-1)
    offs.append(pos)
    pad = (-v.shape[0]) % 8
    if pad:
      v = np.concatenate([v, np.zeros((pad,), np.float32)])
    segs.append(v)
    pos += v.shape[0]
  return jnp.asarray(np.concatenate(segs).reshape(-1, 1)), tuple(offs)


# ----------------------------------------------------------------------------
# Full forward (matches TransformerEncoderLayer.forward at inference)
# ----------------------------------------------------------------------------
def transformer_encoder_layer(src_nchw, params, *, num_steps=None):
  N, C, H, W = src_nchw.shape
  HW = H * W
  g = params["gcn"]
  P = g["w1"].shape[1]
  out_c = params["convs"][0]["w"].shape[-1]

  if num_steps is None:
    # Default: 2 grid steps so both v7x TensorCores get one batch shard; with only
    # 10 inputs the leftover per-step fixed cost on single-TC v5e/v6e is small.
    # Pass num_steps=1 on v5e/v6e to collapse the grid (images unroll in-kernel).
    num_steps = 2 if (N >= 2 and N % 2 == 0) else 1
  assert N % num_steps == 0
  nb = N // num_steps

  x = src_nchw.reshape(N, C, HW)                 # native NCHW flattened; HW stays on lanes
  masks = _make_tap_masks(H, W)

  # GCN weights in column-vector form for the [C, HW] layout. The 1x1 mask-conv bias
  # is dropped: softmax(logits + b) == softmax(logits).
  wm = g["w_mask"]                               # [1, C]
  w1 = jnp.transpose(g["w1"])                    # [P, C]
  w2 = jnp.transpose(g["w2"])                    # [C, P]

  # Conv weights flattened to [Cout, 9*Cin] with conv bias + BN folded:
  #   scale folded INTO the weights, shift kept as a small additive column vector.
  conv_ws, shifts = [], []
  for p in params["convs"]:
    kh, kw, cin, cout = p["w"].shape
    wflat = jnp.transpose(p["w"].reshape(kh * kw * cin, cout))     # [Cout, 9*Cin]
    scale = p["bn_g"] / jnp.sqrt(p["bn_v"] + 1e-5)
    shift = p["bn_b"] + (p["b"] - p["bn_m"]) * scale
    conv_ws.append(wflat * scale[:, None])
    shifts.append(shift)

  vecs, offs = _stack_vectors([g["b1"], g["ln_g"], g["ln_b"], g["b2"]] + shifts)

  inputs = [x, masks, wm, w1, w2, vecs] + conv_ws        # 10 inputs total

  def const_spec(arr):
    shape = arr.shape
    return pl.BlockSpec(shape, lambda s: (0,) * len(shape))

  in_specs = [pl.BlockSpec((nb, C, HW), lambda s: (s, 0, 0))]
  in_specs += [const_spec(a) for a in inputs[1:]]

  kernel = functools.partial(_fused_encoder_kernel, H=H, W=W, C=C, out_c=out_c,
                             P=P, offs=offs, nb=nb)
  out = pl.pallas_call(
      kernel,
      out_shape=jax.ShapeDtypeStruct((N, C, HW), jnp.float32),
      grid=(num_steps,),
      in_specs=in_specs,
      out_specs=pl.BlockSpec((nb, C, HW), lambda s: (s, 0, 0)),
      scratch_shapes=[
          pltpu.VMEM((C, HW), jnp.float32),        # chained activation buffer
          pltpu.VMEM((9 * C, HW), jnp.float32),    # im2col buffer
      ],
      compiler_params=pltpu.CompilerParams(
          dimension_semantics=("parallel",),
          vmem_limit_bytes=32 * 1024 * 1024),      # explicit scoped limit (plenty here)
  )(*inputs)
  return out.reshape(N, C, H, W)


# ----------------------------------------------------------------------------
# Pure-JAX reference for verification
# ----------------------------------------------------------------------------
def ref_forward(src_nchw, params):
  N, C, H, W = src_nchw.shape
  x = jnp.transpose(src_nchw, (0, 2, 3, 1))
  residual = x
  g = params["gcn"]
  xf = x.reshape(N, H * W, C)
  logits = jnp.sum(xf * g["w_mask"], axis=-1, keepdims=True) + g["b_mask"]
  m = jax.nn.softmax(logits, axis=1)
  ctx = jnp.sum(xf * m, axis=1)                                     # [N, C]
  t = ctx @ g["w1"] + g["b1"]
  mu = jnp.mean(t, axis=-1, keepdims=True)
  var = jnp.mean((t - mu) ** 2, axis=-1, keepdims=True)
  t = (t - mu) / jnp.sqrt(var + 1e-5) * g["ln_g"] + g["ln_b"]
  t = jnp.maximum(t, 0.0)
  term = t @ g["w2"] + g["b2"]                                      # [N, C]
  y = 2.0 * xf + term[:, None, :]
  h = y.reshape(N, H, W, C)
  for i, p in enumerate(params["convs"]):
    out = lax.conv_general_dilated(
        h, p["w"], window_strides=(1, 1), padding="SAME",
        dimension_numbers=("NHWC", "HWIO", "NHWC"))
    scale = p["bn_g"] / jnp.sqrt(p["bn_v"] + 1e-5)
    shift = p["bn_b"] + (p["b"] - p["bn_m"]) * scale
    out = jnp.maximum(out * scale + shift, 0.0)
    if i == len(params["convs"]) - 1:
      out = out + residual
    h = out
  return jnp.transpose(h, (0, 3, 1, 2))


# ----------------------------------------------------------------------------
# Deterministic parameter init (shapes implied by the module's __init__)
# ----------------------------------------------------------------------------
def init_params(key, channels, ratio=8, kernel_size=3):
  P = max(1, channels // ratio)
  out_c = channels // 2
  keys = jax.random.split(key, 12)

  def dense(k, shape, fan_in):
    return (jax.random.normal(k, shape, jnp.float32) / math.sqrt(fan_in)).astype(jnp.float32)

  gcn = {
      "w_mask": dense(keys[0], (1, channels), channels),
      "b_mask": jax.random.normal(keys[11], (1, 1), jnp.float32) * 0.1,
      "w1": dense(keys[1], (channels, P), channels),
      "b1": jnp.zeros((1, P), jnp.float32),
      "ln_g": jnp.ones((1, P), jnp.float32),
      "ln_b": jnp.zeros((1, P), jnp.float32),
      "w2": dense(keys[2], (P, channels), P),
      "b2": jnp.zeros((1, channels), jnp.float32),
  }

  conv_io = [(channels, out_c), (out_c, out_c), (out_c, out_c), (out_c, channels)]
  convs = []
  for i, (cin, cout) in enumerate(conv_io):
    fan_in = cin * kernel_size * kernel_size
    convs.append({
        "w": dense(keys[3 + i], (kernel_size, kernel_size, cin, cout), fan_in),
        "b": (jax.random.normal(keys[7 + i], (cout,), jnp.float32) * 0.01),
        "bn_g": jnp.ones((cout,), jnp.float32),
        "bn_b": jnp.zeros((cout,), jnp.float32),
        "bn_m": jnp.zeros((cout,), jnp.float32),
        "bn_v": jnp.ones((cout,), jnp.float32),
    })
  return {"gcn": gcn, "convs": convs}


if __name__ == "__main__":
  key = jax.random.PRNGKey(0)
  k_x, k_p = jax.random.split(key)

  N, C, H, W = 2, 16, 16, 16           # channels divisible by 2 and by ratio=8
  src = jax.random.normal(k_x, (N, C, H, W), jnp.float32)
  params = init_params(k_p, C)

  ref = ref_forward(src, params)

  # Default: 2 "parallel" grid steps (one per v7x TensorCore), 1 image each.
  out = jax.block_until_ready(transformer_encoder_layer(src, params))
  assert out.shape == src.shape and out.dtype == jnp.float32
  np.testing.assert_allclose(np.asarray(out), np.asarray(ref), atol=1e-3, rtol=1e-3)

  # Collapsed grid (1 fat step, both images unrolled in-kernel) — the single-TC
  # v5e/v6e configuration.
  out1 = jax.block_until_ready(transformer_encoder_layer(src, params, num_steps=1))
  np.testing.assert_allclose(np.asarray(out1), np.asarray(ref), atol=1e-3, rtol=1e-3)

  print("KERNEL_OK")
</pallas_src>

<mosaic_0001>
module attributes {stable_mosaic.version = 11 : i64} {
  func.func @_fused_encoder_kernel(%arg0: i32, %arg1: memref<1x16x256xf32, #tpu.memory_space<vmem>>, %arg2: memref<16x256xf32, #tpu.memory_space<vmem>>, %arg3: memref<1x16xf32, #tpu.memory_space<vmem>>, %arg4: memref<2x16xf32, #tpu.memory_space<vmem>>, %arg5: memref<16x2xf32, #tpu.memory_space<vmem>>, %arg6: memref<80x1xf32, #tpu.memory_space<vmem>>, %arg7: memref<8x144xf32, #tpu.memory_space<vmem>>, %arg8: memref<8x72xf32, #tpu.memory_space<vmem>>, %arg9: memref<8x72xf32, #tpu.memory_space<vmem>>, %arg10: memref<16x72xf32, #tpu.memory_space<vmem>>, %arg11: memref<1x16x256xf32, #tpu.memory_space<vmem>>, %arg12: memref<16x256xf32, #tpu.memory_space<vmem>>, %arg13: memref<144x256xf32, #tpu.memory_space<vmem>>) attributes {dimension_semantics = [#tpu.dimension_semantics<parallel>], iteration_bounds = array<i64: 2>, scalar_prefetch = 0 : i64, scratch_operands = 2 : i64, tpu.core_type = #tpu.core_type<tc>, window_params = [{transform_indices = @transform_0, window_bounds = array<i64: 1, 16, 256>}, {pipeline_mode = #tpu.pipeline_mode<synchronous>, transform_indices = @transform_1, window_bounds = array<i64: 16, 256>}, {pipeline_mode = #tpu.pipeline_mode<synchronous>, transform_indices = @transform_2, window_bounds = array<i64: 1, 16>}, {pipeline_mode = #tpu.pipeline_mode<synchronous>, transform_indices = @transform_3, window_bounds = array<i64: 2, 16>}, {pipeline_mode = #tpu.pipeline_mode<synchronous>, transform_indices = @transform_4, window_bounds = array<i64: 16, 2>}, {pipeline_mode = #tpu.pipeline_mode<synchronous>, transform_indices = @transform_5, window_bounds = array<i64: 80, 1>}, {pipeline_mode = #tpu.pipeline_mode<synchronous>, transform_indices = @transform_6, window_bounds = array<i64: 8, 144>}, {pipeline_mode = #tpu.pipeline_mode<synchronous>, transform_indices = @transform_7, window_bounds = array<i64: 8, 72>}, {pipeline_mode = #tpu.pipeline_mode<synchronous>, transform_indices = @transform_8, window_bounds = array<i64: 8, 72>}, {pipeline_mode = #tpu.pipeline_mode<synchronous>, transform_indices = @transform_9, window_bounds = array<i64: 16, 72>}, {transform_indices = @transform_10, window_bounds = array<i64: 1, 16, 256>}]} {
    %c0 = arith.constant 0 : index
    %c0_0 = arith.constant 0 : index
    %0 = vector.load %arg6[%c0, %c0_0] : memref<80x1xf32, #tpu.memory_space<vmem>>, vector<2x1xf32>
    %c8 = arith.constant 8 : index
    %c0_1 = arith.constant 0 : index
    %1 = vector.load %arg6[%c8, %c0_1] : memref<80x1xf32, #tpu.memory_space<vmem>>, vector<2x1xf32>
    %c16 = arith.constant 16 : index
    %c0_2 = arith.constant 0 : index
    %2 = vector.load %arg6[%c16, %c0_2] : memref<80x1xf32, #tpu.memory_space<vmem>>, vector<2x1xf32>
    %c24 = arith.constant 24 : index
    %c0_3 = arith.constant 0 : index
    %3 = vector.load %arg6[%c24, %c0_3] : memref<80x1xf32, #tpu.memory_space<vmem>>, vector<16x1xf32>
    %c40 = arith.constant 40 : index
    %c0_4 = arith.constant 0 : index
    %4 = vector.load %arg6[%c40, %c0_4] : memref<80x1xf32, #tpu.memory_space<vmem>>, vector<8x1xf32>
    %c48 = arith.constant 48 : index
    %c0_5 = arith.constant 0 : index
    %5 = vector.load %arg6[%c48, %c0_5] : memref<80x1xf32, #tpu.memory_space<vmem>>, vector<8x1xf32>
    %c56 = arith.constant 56 : index
    %c0_6 = arith.constant 0 : index
    %6 = vector.load %arg6[%c56, %c0_6] : memref<80x1xf32, #tpu.memory_space<vmem>>, vector<8x1xf32>
    %c64 = arith.constant 64 : index
    %c0_7 = arith.constant 0 : index
    %7 = vector.load %arg6[%c64, %c0_7] : memref<80x1xf32, #tpu.memory_space<vmem>>, vector<16x1xf32>
    %c0_8 = arith.constant 0 : index
    %c0_9 = arith.constant 0 : index
    %8 = vector.load %arg2[%c0_8, %c0_9] : memref<16x256xf32, #tpu.memory_space<vmem>>, vector<1x256xf32>
    %9 = vector.shape_cast %8 : vector<1x256xf32> to vector<1x256xf32>
    %10 = vector.broadcast %9 : vector<1x256xf32> to vector<16x256xf32>
    %c1 = arith.constant 1 : index
    %c0_10 = arith.constant 0 : index
    %11 = vector.load %arg2[%c1, %c0_10] : memref<16x256xf32, #tpu.memory_space<vmem>>, vector<1x256xf32>
    %12 = vector.shape_cast %11 : vector<1x256xf32> to vector<1x256xf32>
    %13 = vector.broadcast %12 : vector<1x256xf32> to vector<16x256xf32>
    %c2 = arith.constant 2 : index
    %c0_11 = arith.constant 0 : index
    %14 = vector.load %arg2[%c2, %c0_11] : memref<16x256xf32, #tpu.memory_space<vmem>>, vector<1x256xf32>
    %15 = vector.shape_cast %14 : vector<1x256xf32> to vector<1x256xf32>
    %16 = vector.broadcast %15 : vector<1x256xf32> to vector<16x256xf32>
    %c3 = arith.constant 3 : index
    %c0_12 = arith.constant 0 : index
    %17 = vector.load %arg2[%c3, %c0_12] : memref<16x256xf32, #tpu.memory_space<vmem>>, vector<1x256xf32>
    %18 = vector.shape_cast %17 : vector<1x256xf32> to vector<1x256xf32>
    %19 = vector.broadcast %18 : vector<1x256xf32> to vector<16x256xf32>
    %c5 = arith.constant 5 : index
    %c0_13 = arith.constant 0 : index
    %20 = vector.load %arg2[%c5, %c0_13] : memref<16x256xf32, #tpu.memory_space<vmem>>, vector<1x256xf32>
    %21 = vector.shape_cast %20 : vector<1x256xf32> to vector<1x256xf32>
    %22 = vector.broadcast %21 : vector<1x256xf32> to vector<16x256xf32>
    %c6 = arith.constant 6 : index
    %c0_14 = arith.constant 0 : index
    %23 = vector.load %arg2[%c6, %c0_14] : memref<16x256xf32, #tpu.memory_space<vmem>>, vector<1x256xf32>
    %24 = vector.shape_cast %23 : vector<1x256xf32> to vector<1x256xf32>
    %25 = vector.broadcast %24 : vector<1x256xf32> to vector<16x256xf32>
    %c7 = arith.constant 7 : index
    %c0_15 = arith.constant 0 : index
    %26 = vector.load %arg2[%c7, %c0_15] : memref<16x256xf32, #tpu.memory_space<vmem>>, vector<1x256xf32>
    %27 = vector.shape_cast %26 : vector<1x256xf32> to vector<1x256xf32>
    %28 = vector.broadcast %27 : vector<1x256xf32> to vector<16x256xf32>
    %c8_16 = arith.constant 8 : index
    %c0_17 = arith.constant 0 : index
    %29 = vector.load %arg2[%c8_16, %c0_17] : memref<16x256xf32, #tpu.memory_space<vmem>>, vector<1x256xf32>
    %30 = vector.shape_cast %29 : vector<1x256xf32> to vector<1x256xf32>
    %31 = vector.broadcast %30 : vector<1x256xf32> to vector<16x256xf32>
    %c0_18 = arith.constant 0 : index
    %c0_19 = arith.constant 0 : index
    %c0_20 = arith.constant 0 : index
    %32 = vector.load %arg1[%c0_18, %c0_19, %c0_20] : memref<1x16x256xf32, #tpu.memory_space<vmem>>, vector<1x16x256xf32>
    %33 = vector.shape_cast %32 : vector<1x16x256xf32> to vector<16x256xf32>
    %c0_21 = arith.constant 0 : index
    %c0_22 = arith.constant 0 : index
    %34 = vector.load %arg3[%c0_21, %c0_22] : memref<1x16xf32, #tpu.memory_space<vmem>>, vector<1x16xf32>
    %cst = arith.constant dense<0.000000e+00> : vector<1x256xf32>
    %35 = tpu.matmul %34, %33, %cst {dimension_numbers = #tpu.dot_dimension_numbers<[1], [0], [0], [1], [0, 0, 1, 1], [], []>} : vector<1x16xf32>, vector<16x256xf32>, vector<1x256xf32> -> vector<1x256xf32>
    %cst_23 = arith.constant dense<0xFF800000> : vector<1xf32>
    %36 = vector.multi_reduction <maximumf>, %35, %cst_23 [1] : vector<1x256xf32> to vector<1xf32>
    %37 = vector.shape_cast %36 : vector<1xf32> to vector<1x1xf32>
    %38 = vector.broadcast %37 : vector<1x1xf32> to vector<1x256xf32>
    %39 = arith.subf %35, %38 : vector<1x256xf32>
    %40 = math.exp %39 : vector<1x256xf32>
    %cst_24 = arith.constant dense<0.000000e+00> : vector<1xf32>
    %41 = vector.multi_reduction <add>, %40, %cst_24 [1] : vector<1x256xf32> to vector<1xf32>
    %42 = vector.shape_cast %41 : vector<1xf32> to vector<1x1xf32>
    %43 = tpu.reciprocal %42 {approx = true} : vector<1x1xf32> -> vector<1x1xf32>
    %44 = vector.broadcast %43 : vector<1x1xf32> to vector<1x256xf32>
    %45 = arith.mulf %40, %44 : vector<1x256xf32>
    %46 = vector.broadcast %45 : vector<1x256xf32> to vector<16x256xf32>
    %47 = arith.mulf %33, %46 : vector<16x256xf32>
    %cst_25 = arith.constant dense<0.000000e+00> : vector<16xf32>
    %48 = vector.multi_reduction <add>, %47, %cst_25 [1] : vector<16x256xf32> to vector<16xf32>
    %49 = vector.shape_cast %48 : vector<16xf32> to vector<16x1xf32>
    %c0_26 = arith.constant 0 : index
    %c0_27 = arith.constant 0 : index
    %50 = vector.load %arg4[%c0_26, %c0_27] : memref<2x16xf32, #tpu.memory_space<vmem>>, vector<2x16xf32>
    %cst_28 = arith.constant dense<0.000000e+00> : vector<2x1xf32>
    %51 = tpu.matmul %50, %49, %cst_28 {dimension_numbers = #tpu.dot_dimension_numbers<[1], [0], [0], [1], [0, 0, 1, 1], [], []>} : vector<2x16xf32>, vector<16x1xf32>, vector<2x1xf32> -> vector<2x1xf32>
    %52 = arith.addf %51, %0 : vector<2x1xf32>
    %cst_29 = arith.constant dense<0.000000e+00> : vector<1xf32>
    %53 = vector.multi_reduction <add>, %52, %cst_29 [0] : vector<2x1xf32> to vector<1xf32>
    %54 = vector.shape_cast %53 : vector<1xf32> to vector<1x1xf32>
    %cst_30 = arith.constant 2.000000e+00 : f32
    %55 = vector.broadcast %cst_30 : f32 to vector<1x1xf32>
    %56 = arith.divf %54, %55 : vector<1x1xf32>
    %57 = vector.broadcast %56 : vector<1x1xf32> to vector<2x1xf32>
    %58 = arith.subf %52, %57 : vector<2x1xf32>
    %59 = vector.broadcast %56 : vector<1x1xf32> to vector<2x1xf32>
    %60 = arith.subf %52, %59 : vector<2x1xf32>
    %61 = arith.mulf %58, %60 : vector<2x1xf32>
    %cst_31 = arith.constant dense<0.000000e+00> : vector<1xf32>
    %62 = vector.multi_reduction <add>, %61, %cst_31 [0] : vector<2x1xf32> to vector<1xf32>
    %63 = vector.shape_cast %62 : vector<1xf32> to vector<1x1xf32>
    %cst_32 = arith.constant 2.000000e+00 : f32
    %64 = vector.broadcast %cst_32 : f32 to vector<1x1xf32>
    %65 = arith.divf %63, %64 : vector<1x1xf32>
    %66 = vector.broadcast %56 : vector<1x1xf32> to vector<2x1xf32>
    %67 = arith.subf %52, %66 : vector<2x1xf32>
    %cst_33 = arith.constant 9.99999974E-6 : f32
    %68 = vector.broadcast %cst_33 : f32 to vector<1x1xf32>
    %69 = arith.addf %65, %68 : vector<1x1xf32>
    %70 = math.rsqrt %69 : vector<1x1xf32>
    %71 = vector.broadcast %70 : vector<1x1xf32> to vector<2x1xf32>
    %72 = arith.mulf %67, %71 : vector<2x1xf32>
    %73 = arith.mulf %72, %1 : vector<2x1xf32>
    %74 = arith.addf %73, %2 : vector<2x1xf32>
    %cst_34 = arith.constant 0.000000e+00 : f32
    %75 = vector.broadcast %cst_34 : f32 to vector<2x1xf32>
    %76 = arith.maximumf %74, %75 : vector<2x1xf32>
    %c0_35 = arith.constant 0 : index
    %c0_36 = arith.constant 0 : index
    %77 = vector.load %arg5[%c0_35, %c0_36] : memref<16x2xf32, #tpu.memory_space<vmem>>, vector<16x2xf32>
    %cst_37 = arith.constant dense<0.000000e+00> : vector<16x1xf32>
    %78 = tpu.matmul %77, %76, %cst_37 {dimension_numbers = #tpu.dot_dimension_numbers<[1], [0], [0], [1], [0, 0, 1, 1], [], []>} : vector<16x2xf32>, vector<2x1xf32>, vector<16x1xf32> -> vector<16x1xf32>
    %79 = arith.addf %78, %3 : vector<16x1xf32>
    %cst_38 = arith.constant 2.000000e+00 : f32
    %80 = vector.broadcast %cst_38 : f32 to vector<16x256xf32>
    %81 = arith.mulf %80, %33 : vector<16x256xf32>
    %82 = vector.broadcast %79 : vector<16x1xf32> to vector<16x256xf32>
    %83 = arith.addf %81, %82 : vector<16x256xf32>
    %c0_39 = arith.constant 0 : index
    %c0_40 = arith.constant 0 : index
    %84 = vector.load %arg12[%c0_39, %c0_40] : memref<16x256xf32, #tpu.memory_space<vmem>>, vector<16x256xf32>
    tpu.vector_store %arg12[%c0_39, %c0_40], %83 {strides = array<i32>} : memref<16x256xf32, #tpu.memory_space<vmem>>, vector<16x256xf32>,
    %c0_41 = arith.constant 0 : index
    %c0_42 = arith.constant 0 : index
    %85 = vector.load %arg12[%c0_41, %c0_42] : memref<16x256xf32, #tpu.memory_space<vmem>>, vector<16x256xf32>
    %c17_i32 = arith.constant 17 : i32
    %86 = tpu.dynamic_rotate %85 by %c17_i32 dim 1 : vector<16x256xf32>, i32 -> vector<16x256xf32>
    %87 = arith.mulf %86, %10 : vector<16x256xf32>
    %c0_43 = arith.constant 0 : index
    %c0_44 = arith.constant 0 : index
    %88 = vector.load %arg13[%c0_43, %c0_44] : memref<144x256xf32, #tpu.memory_space<vmem>>, vector<16x256xf32>
    tpu.vector_store %arg13[%c0_43, %c0_44], %87 {strides = array<i32>} : memref<144x256xf32, #tpu.memory_space<vmem>>, vector<16x256xf32>,
    %c16_i32 = arith.constant 16 : i32
    %89 = tpu.dynamic_rotate %85 by %c16_i32 dim 1 : vector<16x256xf32>, i32 -> vector<16x256xf32>
    %90 = arith.mulf %89, %13 : vector<16x256xf32>
    %c16_45 = arith.constant 16 : index
    %c0_46 = arith.constant 0 : index
    %91 = vector.load %arg13[%c16_45, %c0_46] : memref<144x256xf32, #tpu.memory_space<vmem>>, vector<16x256xf32>
    tpu.vector_store %arg13[%c16_45, %c0_46], %90 {strides = array<i32>} : memref<144x256xf32, #tpu.memory_space<vmem>>, vector<16x256xf32>,
    %c15_i32 = arith.constant 15 : i32
    %92 = tpu.dynamic_rotate %85 by %c15_i32 dim 1 : vector<16x256xf32>, i32 -> vector<16x256xf32>
    %93 = arith.mulf %92, %16 : vector<16x256xf32>
    %c32 = arith.constant 32 : index
    %c0_47 = arith.constant 0 : index
    %94 = vector.load %arg13[%c32, %c0_47] : memref<144x256xf32, #tpu.memory_space<vmem>>, vector<16x256xf32>
    tpu.vector_store %arg13[%c32, %c0_47], %93 {strides = array<i32>} : memref<144x256xf32, #tpu.memory_space<vmem>>, vector<16x256xf32>,
    %c1_i32 = arith.constant 1 : i32
    %95 = tpu.dynamic_rotate %85 by %c1_i32 dim 1 : vector<16x256xf32>, i32 -> vector<16x256xf32>
    %96 = arith.mulf %95, %19 : vector<16x256xf32>
    %c48_48 = arith.constant 48 : index
    %c0_49 = arith.constant 0 : index
    %97 = vector.load %arg13[%c48_48, %c0_49] : memref<144x256xf32, #tpu.memory_space<vmem>>, vector<16x256xf32>
    tpu.vector_store %arg13[%c48_48, %c0_49], %96 {strides = array<i32>} : memref<144x256xf32, #tpu.memory_space<vmem>>, vector<16x256xf32>,
    %c64_50 = arith.constant 64 : index
    %c0_51 = arith.constant 0 : index
    %98 = vector.load %arg13[%c64_50, %c0_51] : memref<144x256xf32, #tpu.memory_space<vmem>>, vector<16x256xf32>
    tpu.vector_store %arg13[%c64_50, %c0_51], %85 {strides = array<i32>} : memref<144x256xf32, #tpu.memory_space<vmem>>, vector<16x256xf32>,
    %c255_i32 = arith.constant 255 : i32
    %99 = tpu.dynamic_rotate %85 by %c255_i32 dim 1 : vector<16x256xf32>, i32 -> vector<16x256xf32>
    %100 = arith.mulf %99, %22 : vector<16x256xf32>
    %c80 = arith.constant 80 : index
    %c0_52 = arith.constant 0 : index
    %101 = vector.load %arg13[%c80, %c0_52] : memref<144x256xf32, #tpu.memory_space<vmem>>, vector<16x256xf32>
    tpu.vector_store %arg13[%c80, %c0_52], %100 {strides = array<i32>} : memref<144x256xf32, #tpu.memory_space<vmem>>, vector<16x256xf32>,
    %c241_i32 = arith.constant 241 : i32
    %102 = tpu.dynamic_rotate %85 by %c241_i32 dim 1 : vector<16x256xf32>, i32 -> vector<16x256xf32>
    %103 = arith.mulf %102, %25 : vector<16x256xf32>
    %c96 = arith.constant 96 : index
    %c0_53 = arith.constant 0 : index
    %104 = vector.load %arg13[%c96, %c0_53] : memref<144x256xf32, #tpu.memory_space<vmem>>, vector<16x256xf32>
    tpu.vector_store %arg13[%c96, %c0_53], %103 {strides = array<i32>} : memref<144x256xf32, #tpu.memory_space<vmem>>, vector<16x256xf32>,
    %c240_i32 = arith.constant 240 : i32
    %105 = tpu.dynamic_rotate %85 by %c240_i32 dim 1 : vector<16x256xf32>, i32 -> vector<16x256xf32>
    %106 = arith.mulf %105, %28 : vector<16x256xf32>
    %c112 = arith.constant 112 : index
    %c0_54 = arith.constant 0 : index
    %107 = vector.load %arg13[%c112, %c0_54] : memref<144x256xf32, #tpu.memory_space<vmem>>, vector<16x256xf32>
    tpu.vector_store %arg13[%c112, %c0_54], %106 {strides = array<i32>} : memref<144x256xf32, #tpu.memory_space<vmem>>, vector<16x256xf32>,
    %c239_i32 = arith.constant 239 : i32
    %108 = tpu.dynamic_rotate %85 by %c239_i32 dim 1 : vector<16x256xf32>, i32 -> vector<16x256xf32>
    %109 = arith.mulf %108, %31 : vector<16x256xf32>
    %c128 = arith.constant 128 : index
    %c0_55 = arith.constant 0 : index
    %110 = vector.load %arg13[%c128, %c0_55] : memref<144x256xf32, #tpu.memory_space<vmem>>, vector<16x256xf32>
    tpu.vector_store %arg13[%c128, %c0_55], %109 {strides = array<i32>} : memref<144x256xf32, #tpu.memory_space<vmem>>, vector<16x256xf32>,
    %c0_56 = arith.constant 0 : index
    %c0_57 = arith.constant 0 : index
    %111 = vector.load %arg13[%c0_56, %c0_57] : memref<144x256xf32, #tpu.memory_space<vmem>>, vector<144x256xf32>
    %c0_58 = arith.constant 0 : index
    %c0_59 = arith.constant 0 : index
    %112 = vector.load %arg7[%c0_58, %c0_59] : memref<8x144xf32, #tpu.memory_space<vmem>>, vector<8x144xf32>
    %cst_60 = arith.constant dense<0.000000e+00> : vector<8x256xf32>
    %113 = tpu.matmul %112, %111, %cst_60 {dimension_numbers = #tpu.dot_dimension_numbers<[1], [0], [0], [1], [0, 0, 1, 1], [], []>} : vector<8x144xf32>, vector<144x256xf32>, vector<8x256xf32> -> vector<8x256xf32>
    %114 = vector.broadcast %4 : vector<8x1xf32> to vector<8x256xf32>
    %115 = arith.addf %113, %114 : vector<8x256xf32>
    %cst_61 = arith.constant 0.000000e+00 : f32
    %116 = vector.broadcast %cst_61 : f32 to vector<8x256xf32>
    %117 = arith.maximumf %115, %116 : vector<8x256xf32>
    %c0_62 = arith.constant 0 : index
    %c0_63 = arith.constant 0 : index
    %118 = vector.load %arg12[%c0_62, %c0_63] : memref<16x256xf32, #tpu.memory_space<vmem>>, vector<8x256xf32>
    tpu.vector_store %arg12[%c0_62, %c0_63], %117 {strides = array<i32>} : memref<16x256xf32, #tpu.memory_space<vmem>>, vector<8x256xf32>,
    %c0_64 = arith.constant 0 : index
    %c0_65 = arith.constant 0 : index
    %119 = vector.load %arg12[%c0_64, %c0_65] : memref<16x256xf32, #tpu.memory_space<vmem>>, vector<8x256xf32>
    %c17_i32_66 = arith.constant 17 : i32
    %120 = tpu.dynamic_rotate %119 by %c17_i32_66 dim 1 : vector<8x256xf32>, i32 -> vector<8x256xf32>
    %121 = vector.extract_strided_slice %10 {offsets = [0, 0], sizes = [8, 256], strides = [1, 1]} : vector<16x256xf32> to vector<8x256xf32>
    %122 = arith.mulf %120, %121 : vector<8x256xf32>
    %c0_67 = arith.constant 0 : index
    %c0_68 = arith.constant 0 : index
    %123 = vector.load %arg13[%c0_67, %c0_68] : memref<144x256xf32, #tpu.memory_space<vmem>>, vector<8x256xf32>
    tpu.vector_store %arg13[%c0_67, %c0_68], %122 {strides = array<i32>} : memref<144x256xf32, #tpu.memory_space<vmem>>, vector<8x256xf32>,
    %c16_i32_69 = arith.constant 16 : i32
    %124 = tpu.dynamic_rotate %119 by %c16_i32_69 dim 1 : vector<8x256xf32>, i32 -> vector<8x256xf32>
    %125 = vector.extract_strided_slice %13 {offsets = [0, 0], sizes = [8, 256], strides = [1, 1]} : vector<16x256xf32> to vector<8x256xf32>
    %126 = arith.mulf %124, %125 : vector<8x256xf32>
    %c8_70 = arith.constant 8 : index
    %c0_71 = arith.constant 0 : index
    %127 = vector.load %arg13[%c8_70, %c0_71] : memref<144x256xf32, #tpu.memory_space<vmem>>, vector<8x256xf32>
    tpu.vector_store %arg13[%c8_70, %c0_71], %126 {strides = array<i32>} : memref<144x256xf32, #tpu.memory_space<vmem>>, vector<8x256xf32>,
    %c15_i32_72 = arith.constant 15 : i32
    %128 = tpu.dynamic_rotate %119 by %c15_i32_72 dim 1 : vector<8x256xf32>, i32 -> vector<8x256xf32>
    %129 = vector.extract_strided_slice %16 {offsets = [0, 0], sizes = [8, 256], strides = [1, 1]} : vector<16x256xf32> to vector<8x256xf32>
    %130 = arith.mulf %128, %129 : vector<8x256xf32>
    %c16_73 = arith.constant 16 : index
    %c0_74 = arith.constant 0 : index
    %131 = vector.load %arg13[%c16_73, %c0_74] : memref<144x256xf32, #tpu.memory_space<vmem>>, vector<8x256xf32>
    tpu.vector_store %arg13[%c16_73, %c0_74], %130 {strides = array<i32>} : memref<144x256xf32, #tpu.memory_space<vmem>>, vector<8x256xf32>,
    %c1_i32_75 = arith.constant 1 : i32
    %132 = tpu.dynamic_rotate %119 by %c1_i32_75 dim 1 : vector<8x256xf32>, i32 -> vector<8x256xf32>
    %133 = vector.extract_strided_slice %19 {offsets = [0, 0], sizes = [8, 256], strides = [1, 1]} : vector<16x256xf32> to vector<8x256xf32>
    %134 = arith.mulf %132, %133 : vector<8x256xf32>
    %c24_76 = arith.constant 24 : index
    %c0_77 = arith.constant 0 : index
    %135 = vector.load %arg13[%c24_76, %c0_77] : memref<144x256xf32, #tpu.memory_space<vmem>>, vector<8x256xf32>
    tpu.vector_store %arg13[%c24_76, %c0_77], %134 {strides = array<i32>} : memref<144x256xf32, #tpu.memory_space<vmem>>, vector<8x256xf32>,
    %c32_78 = arith.constant 32 : index
    %c0_79 = arith.constant 0 : index
    %136 = vector.load %arg13[%c32_78, %c0_79] : memref<144x256xf32, #tpu.memory_space<vmem>>, vector<8x256xf32>
    tpu.vector_store %arg13[%c32_78, %c0_79], %119 {strides = array<i32>} : memref<144x256xf32, #tpu.memory_space<vmem>>, vector<8x256xf32>,
    %c255_i32_80 = arith.constant 255 : i32
    %137 = tpu.dynamic_rotate %119 by %c255_i32_80 dim 1 : vector<8x256xf32>, i32 -> vector<8x256xf32>
    %138 = vector.extract_strided_slice %22 {offsets = [0, 0], sizes = [8, 256], strides = [1, 1]} : vector<16x256xf32> to vector<8x256xf32>
    %139 = arith.mulf %137, %138 : vector<8x256xf32>
    %c40_81 = arith.constant 40 : index
    %c0_82 = arith.constant 0 : index
    %140 = vector.load %arg13[%c40_81, %c0_82] : memref<144x256xf32, #tpu.memory_space<vmem>>, vector<8x256xf32>
    tpu.vector_store %arg13[%c40_81, %c0_82], %139 {strides = array<i32>} : memref<144x256xf32, #tpu.memory_space<vmem>>, vector<8x256xf32>,
    %c241_i32_83 = arith.constant 241 : i32
    %141 = tpu.dynamic_rotate %119 by %c241_i32_83 dim 1 : vector<8x256xf32>, i32 -> vector<8x256xf32>
    %142 = vector.extract_strided_slice %25 {offsets = [0, 0], sizes = [8, 256], strides = [1, 1]} : vector<16x256xf32> to vector<8x256xf32>
    %143 = arith.mulf %141, %142 : vector<8x256xf32>
    %c48_84 = arith.constant 48 : index
    %c0_85 = arith.constant 0 : index
    %144 = vector.load %arg13[%c48_84, %c0_85] : memref<144x256xf32, #tpu.memory_space<vmem>>, vector<8x256xf32>
    tpu.vector_store %arg13[%c48_84, %c0_85], %143 {strides = array<i32>} : memref<144x256xf32, #tpu.memory_space<vmem>>, vector<8x256xf32>,
    %c240_i32_86 = arith.constant 240 : i32
    %145 = tpu.dynamic_rotate %119 by %c240_i32_86 dim 1 : vector<8x256xf32>, i32 -> vector<8x256xf32>
    %146 = vector.extract_strided_slice %28 {offsets = [0, 0], sizes = [8, 256], strides = [1, 1]} : vector<16x256xf32> to vector<8x256xf32>
    %147 = arith.mulf %145, %146 : vector<8x256xf32>
    %c56_87 = arith.constant 56 : index
    %c0_88 = arith.constant 0 : index
    %148 = vector.load %arg13[%c56_87, %c0_88] : memref<144x256xf32, #tpu.memory_space<vmem>>, vector<8x256xf32>
    tpu.vector_store %arg13[%c56_87, %c0_88], %147 {strides = array<i32>} : memref<144x256xf32, #tpu.memory_space<vmem>>, vector<8x256xf32>,
    %c239_i32_89 = arith.constant 239 : i32
    %149 = tpu.dynamic_rotate %119 by %c239_i32_89 dim 1 : vector<8x256xf32>, i32 -> vector<8x256xf32>
    %150 = vector.extract_strided_slice %31 {offsets = [0, 0], sizes = [8, 256], strides = [1, 1]} : vector<16x256xf32> to vector<8x256xf32>
    %151 = arith.mulf %149, %150 : vector<8x256xf32>
    %c64_90 = arith.constant 64 : index
    %c0_91 = arith.constant 0 : index
    %152 = vector.load %arg13[%c64_90, %c0_91] : memref<144x256xf32, #tpu.memory_space<vmem>>, vector<8x256xf32>
    tpu.vector_store %arg13[%c64_90, %c0_91], %151 {strides = array<i32>} : memref<144x256xf32, #tpu.memory_space<vmem>>, vector<8x256xf32>,
    %c0_92 = arith.constant 0 : index
    %c0_93 = arith.constant 0 : index
    %153 = vector.load %arg13[%c0_92, %c0_93] : memref<144x256xf32, #tpu.memory_space<vmem>>, vector<72x256xf32>
    %c0_94 = arith.constant 0 : index
    %c0_95 = arith.constant 0 : index
    %154 = vector.load %arg8[%c0_94, %c0_95] : memref<8x72xf32, #tpu.memory_space<vmem>>, vector<8x72xf32>
    %cst_96 = arith.constant dense<0.000000e+00> : vector<8x256xf32>
    %155 = tpu.matmul %154, %153, %cst_96 {dimension_numbers = #tpu.dot_dimension_numbers<[1], [0], [0], [1], [0, 0, 1, 1], [], []>} : vector<8x72xf32>, vector<72x256xf32>, vector<8x256xf32> -> vector<8x256xf32>
    %156 = vector.broadcast %5 : vector<8x1xf32> to vector<8x256xf32>
    %157 = arith.addf %155, %156 : vector<8x256xf32>
    %cst_97 = arith.constant 0.000000e+00 : f32
    %158 = vector.broadcast %cst_97 : f32 to vector<8x256xf32>
    %159 = arith.maximumf %157, %158 : vector<8x256xf32>
    %c0_98 = arith.constant 0 : index
    %c0_99 = arith.constant 0 : index
    %160 = vector.load %arg12[%c0_98, %c0_99] : memref<16x256xf32, #tpu.memory_space<vmem>>, vector<8x256xf32>
    tpu.vector_store %arg12[%c0_98, %c0_99], %159 {strides = array<i32>} : memref<16x256xf32, #tpu.memory_space<vmem>>, vector<8x256xf32>,
    %c0_100 = arith.constant 0 : index
    %c0_101 = arith.constant 0 : index
    %161 = vector.load %arg12[%c0_100, %c0_101] : memref<16x256xf32, #tpu.memory_space<vmem>>, vector<8x256xf32>
    %c17_i32_102 = arith.constant 17 : i32
    %162 = tpu.dynamic_rotate %161 by %c17_i32_102 dim 1 : vector<8x256xf32>, i32 -> vector<8x256xf32>
    %163 = vector.extract_strided_slice %10 {offsets = [0, 0], sizes = [8, 256], strides = [1, 1]} : vector<16x256xf32> to vector<8x256xf32>
    %164 = arith.mulf %162, %163 : vector<8x256xf32>
    %c0_103 = arith.constant 0 : index
    %c0_104 = arith.constant 0 : index
    %165 = vector.load %arg13[%c0_103, %c0_104] : memref<144x256xf32, #tpu.memory_space<vmem>>, vector<8x256xf32>
    tpu.vector_store %arg13[%c0_103, %c0_104], %164 {strides = array<i32>} : memref<144x256xf32, #tpu.memory_space<vmem>>, vector<8x256xf32>,
    %c16_i32_105 = arith.constant 16 : i32
    %166 = tpu.dynamic_rotate %161 by %c16_i32_105 dim 1 : vector<8x256xf32>, i32 -> vector<8x256xf32>
    %167 = vector.extract_strided_slice %13 {offsets = [0, 0], sizes = [8, 256], strides = [1, 1]} : vector<16x256xf32> to vector<8x256xf32>
    %168 = arith.mulf %166, %167 : vector<8x256xf32>
    %c8_106 = arith.constant 8 : index
    %c0_107 = arith.constant 0 : index
    %169 = vector.load %arg13[%c8_106, %c0_107] : memref<144x256xf32, #tpu.memory_space<vmem>>, vector<8x256xf32>
    tpu.vector_store %arg13[%c8_106, %c0_107], %168 {strides = array<i32>} : memref<144x256xf32, #tpu.memory_space<vmem>>, vector<8x256xf32>,
    %c15_i32_108 = arith.constant 15 : i32
    %170 = tpu.dynamic_rotate %161 by %c15_i32_108 dim 1 : vector<8x256xf32>, i32 -> vector<8x256xf32>
    %171 = vector.extract_strided_slice %16 {offsets = [0, 0], sizes = [8, 256], strides = [1, 1]} : vector<16x256xf32> to vector<8x256xf32>
    %172 = arith.mulf %170, %171 : vector<8x256xf32>
    %c16_109 = arith.constant 16 : index
    %c0_110 = arith.constant 0 : index
    %173 = vector.load %arg13[%c16_109, %c0_110] : memref<144x256xf32, #tpu.memory_space<vmem>>, vector<8x256xf32>
    tpu.vector_store %arg13[%c16_109, %c0_110], %172 {strides = array<i32>} : memref<144x256xf32, #tpu.memory_space<vmem>>, vector<8x256xf32>,
    %c1_i32_111 = arith.constant 1 : i32
    %174 = tpu.dynamic_rotate %161 by %c1_i32_111 dim 1 : vector<8x256xf32>, i32 -> vector<8x256xf32>
    %175 = vector.extract_strided_slice %19 {offsets = [0, 0], sizes = [8, 256], strides = [1, 1]} : vector<16x256xf32> to vector<8x256xf32>
    %176 = arith.mulf %174, %175 : vector<8x256xf32>
    %c24_112 = arith.constant 24 : index
    %c0_113 = arith.constant 0 : index
    %177 = vector.load %arg13[%c24_112, %c0_113] : memref<144x256xf32, #tpu.memory_space<vmem>>, vector<8x256xf32>
    tpu.vector_store %arg13[%c24_112, %c0_113], %176 {strides = array<i32>} : memref<144x256xf32, #tpu.memory_space<vmem>>, vector<8x256xf32>,
    %c32_114 = arith.constant 32 : index
    %c0_115 = arith.constant 0 : index
    %178 = vector.load %arg13[%c32_114, %c0_115] : memref<144x256xf32, #tpu.memory_space<vmem>>, vector<8x256xf32>
    tpu.vector_store %arg13[%c32_114, %c0_115], %161 {strides = array<i32>} : memref<144x256xf32, #tpu.memory_space<vmem>>, vector<8x256xf32>,
    %c255_i32_116 = arith.constant 255 : i32
    %179 = tpu.dynamic_rotate %161 by %c255_i32_116 dim 1 : vector<8x256xf32>, i32 -> vector<8x256xf32>
    %180 = vector.extract_strided_slice %22 {offsets = [0, 0], sizes = [8, 256], strides = [1, 1]} : vector<16x256xf32> to vector<8x256xf32>
    %181 = arith.mulf %179, %180 : vector<8x256xf32>
    %c40_117 = arith.constant 40 : index
    %c0_118 = arith.constant 0 : index
    %182 = vector.load %arg13[%c40_117, %c0_118] : memref<144x256xf32, #tpu.memory_space<vmem>>, vector<8x256xf32>
    tpu.vector_store %arg13[%c40_117, %c0_118], %181 {strides = array<i32>} : memref<144x256xf32, #tpu.memory_space<vmem>>, vector<8x256xf32>,
    %c241_i32_119 = arith.constant 241 : i32
    %183 = tpu.dynamic_rotate %161 by %c241_i32_119 dim 1 : vector<8x256xf32>, i32 -> vector<8x256xf32>
    %184 = vector.extract_strided_slice %25 {offsets = [0, 0], sizes = [8, 256], strides = [1, 1]} : vector<16x256xf32> to vector<8x256xf32>
    %185 = arith.mulf %183, %184 : vector<8x256xf32>
    %c48_120 = arith.constant 48 : index
    %c0_121 = arith.constant 0 : index
    %186 = vector.load %arg13[%c48_120, %c0_121] : memref<144x256xf32, #tpu.memory_space<vmem>>, vector<8x256xf32>
    tpu.vector_store %arg13[%c48_120, %c0_121], %185 {strides = array<i32>} : memref<144x256xf32, #tpu.memory_space<vmem>>, vector<8x256xf32>,
    %c240_i32_122 = arith.constant 240 : i32
    %187 = tpu.dynamic_rotate %161 by %c240_i32_122 dim 1 : vector<8x256xf32>, i32 -> vector<8x256xf32>
    %188 = vector.extract_strided_slice %28 {offsets = [0, 0], sizes = [8, 256], strides = [1, 1]} : vector<16x256xf32> to vector<8x256xf32>
    %189 = arith.mulf %187, %188 : vector<8x256xf32>
    %c56_123 = arith.constant 56 : index
    %c0_124 = arith.constant 0 : index
    %190 = vector.load %arg13[%c56_123, %c0_124] : memref<144x256xf32, #tpu.memory_space<vmem>>, vector<8x256xf32>
    tpu.vector_store %arg13[%c56_123, %c0_124], %189 {strides = array<i32>} : memref<144x256xf32, #tpu.memory_space<vmem>>, vector<8x256xf32>,
    %c239_i32_125 = arith.constant 239 : i32
    %191 = tpu.dynamic_rotate %161 by %c239_i32_125 dim 1 : vector<8x256xf32>, i32 -> vector<8x256xf32>
    %192 = vector.extract_strided_slice %31 {offsets = [0, 0], sizes = [8, 256], strides = [1, 1]} : vector<16x256xf32> to vector<8x256xf32>
    %193 = arith.mulf %191, %192 : vector<8x256xf32>
    %c64_126 = arith.constant 64 : index
    %c0_127 = arith.constant 0 : index
    %194 = vector.load %arg13[%c64_126, %c0_127] : memref<144x256xf32, #tpu.memory_space<vmem>>, vector<8x256xf32>
    tpu.vector_store %arg13[%c64_126, %c0_127], %193 {strides = array<i32>} : memref<144x256xf32, #tpu.memory_space<vmem>>, vector<8x256xf32>,
    %c0_128 = arith.constant 0 : index
    %c0_129 = arith.constant 0 : index
    %195 = vector.load %arg13[%c0_128, %c0_129] : memref<144x256xf32, #tpu.memory_space<vmem>>, vector<72x256xf32>
    %c0_130 = arith.constant 0 : index
    %c0_131 = arith.constant 0 : index
    %196 = vector.load %arg9[%c0_130, %c0_131] : memref<8x72xf32, #tpu.memory_space<vmem>>, vector<8x72xf32>
    %cst_132 = arith.constant dense<0.000000e+00> : vector<8x256xf32>
    %197 = tpu.matmul %196, %195, %cst_132 {dimension_numbers = #tpu.dot_dimension_numbers<[1], [0], [0], [1], [0, 0, 1, 1], [], []>} : vector<8x72xf32>, vector<72x256xf32>, vector<8x256xf32> -> vector<8x256xf32>
    %198 = vector.broadcast %6 : vector<8x1xf32> to vector<8x256xf32>
    %199 = arith.addf %197, %198 : vector<8x256xf32>
    %cst_133 = arith.constant 0.000000e+00 : f32
    %200 = vector.broadcast %cst_133 : f32 to vector<8x256xf32>
    %201 = arith.maximumf %199, %200 : vector<8x256xf32>
    %c0_134 = arith.constant 0 : index
    %c0_135 = arith.constant 0 : index
    %202 = vector.load %arg12[%c0_134, %c0_135] : memref<16x256xf32, #tpu.memory_space<vmem>>, vector<8x256xf32>
    tpu.vector_store %arg12[%c0_134, %c0_135], %201 {strides = array<i32>} : memref<16x256xf32, #tpu.memory_space<vmem>>, vector<8x256xf32>,
    %c0_136 = arith.constant 0 : index
    %c0_137 = arith.constant 0 : index
    %203 = vector.load %arg12[%c0_136, %c0_137] : memref<16x256xf32, #tpu.memory_space<vmem>>, vector<8x256xf32>
    %c17_i32_138 = arith.constant 17 : i32
    %204 = tpu.dynamic_rotate %203 by %c17_i32_138 dim 1 : vector<8x256xf32>, i32 -> vector<8x256xf32>
    %205 = vector.extract_strided_slice %10 {offsets = [0, 0], sizes = [8, 256], strides = [1, 1]} : vector<16x256xf32> to vector<8x256xf32>
    %206 = arith.mulf %204, %205 : vector<8x256xf32>
    %c0_139 = arith.constant 0 : index
    %c0_140 = arith.constant 0 : index
    %207 = vector.load %arg13[%c0_139, %c0_140] : memref<144x256xf32, #tpu.memory_space<vmem>>, vector<8x256xf32>
    tpu.vector_store %arg13[%c0_139, %c0_140], %206 {strides = array<i32>} : memref<144x256xf32, #tpu.memory_space<vmem>>, vector<8x256xf32>,
    %c16_i32_141 = arith.constant 16 : i32
    %208 = tpu.dynamic_rotate %203 by %c16_i32_141 dim 1 : vector<8x256xf32>, i32 -> vector<8x256xf32>
    %209 = vector.extract_strided_slice %13 {offsets = [0, 0], sizes = [8, 256], strides = [1, 1]} : vector<16x256xf32> to vector<8x256xf32>
    %210 = arith.mulf %208, %209 : vector<8x256xf32>
    %c8_142 = arith.constant 8 : index
    %c0_143 = arith.constant 0 : index
    %211 = vector.load %arg13[%c8_142, %c0_143] : memref<144x256xf32, #tpu.memory_space<vmem>>, vector<8x256xf32>
    tpu.vector_store %arg13[%c8_142, %c0_143], %210 {strides = array<i32>} : memref<144x256xf32, #tpu.memory_space<vmem>>, vector<8x256xf32>,
    %c15_i32_144 = arith.constant 15 : i32
    %212 = tpu.dynamic_rotate %203 by %c15_i32_144 dim 1 : vector<8x256xf32>, i32 -> vector<8x256xf32>
    %213 = vector.extract_strided_slice %16 {offsets = [0, 0], sizes = [8, 256], strides = [1, 1]} : vector<16x256xf32> to vector<8x256xf32>
    %214 = arith.mulf %212, %213 : vector<8x256xf32>
    %c16_145 = arith.constant 16 : index
    %c0_146 = arith.constant 0 : index
    %215 = vector.load %arg13[%c16_145, %c0_146] : memref<144x256xf32, #tpu.memory_space<vmem>>, vector<8x256xf32>
    tpu.vector_store %arg13[%c16_145, %c0_146], %214 {strides = array<i32>} : memref<144x256xf32, #tpu.memory_space<vmem>>, vector<8x256xf32>,
    %c1_i32_147 = arith.constant 1 : i32
    %216 = tpu.dynamic_rotate %203 by %c1_i32_147 dim 1 : vector<8x256xf32>, i32 -> vector<8x256xf32>
    %217 = vector.extract_strided_slice %19 {offsets = [0, 0], sizes = [8, 256], strides = [1, 1]} : vector<16x256xf32> to vector<8x256xf32>
    %218 = arith.mulf %216, %217 : vector<8x256xf32>
    %c24_148 = arith.constant 24 : index
    %c0_149 = arith.constant 0 : index
    %219 = vector.load %arg13[%c24_148, %c0_149] : memref<144x256xf32, #tpu.memory_space<vmem>>, vector<8x256xf32>
    tpu.vector_store %arg13[%c24_148, %c0_149], %218 {strides = array<i32>} : memref<144x256xf32, #tpu.memory_space<vmem>>, vector<8x256xf32>,
    %c32_150 = arith.constant 32 : index
    %c0_151 = arith.constant 0 : index
    %220 = vector.load %arg13[%c32_150, %c0_151] : memref<144x256xf32, #tpu.memory_space<vmem>>, vector<8x256xf32>
    tpu.vector_store %arg13[%c32_150, %c0_151], %203 {strides = array<i32>} : memref<144x256xf32, #tpu.memory_space<vmem>>, vector<8x256xf32>,
    %c255_i32_152 = arith.constant 255 : i32
    %221 = tpu.dynamic_rotate %203 by %c255_i32_152 dim 1 : vector<8x256xf32>, i32 -> vector<8x256xf32>
    %222 = vector.extract_strided_slice %22 {offsets = [0, 0], sizes = [8, 256], strides = [1, 1]} : vector<16x256xf32> to vector<8x256xf32>
    %223 = arith.mulf %221, %222 : vector<8x256xf32>
    %c40_153 = arith.constant 40 : index
    %c0_154 = arith.constant 0 : index
    %224 = vector.load %arg13[%c40_153, %c0_154] : memref<144x256xf32, #tpu.memory_space<vmem>>, vector<8x256xf32>
    tpu.vector_store %arg13[%c40_153, %c0_154], %223 {strides = array<i32>} : memref<144x256xf32, #tpu.memory_space<vmem>>, vector<8x256xf32>,
    %c241_i32_155 = arith.constant 241 : i32
    %225 = tpu.dynamic_rotate %203 by %c241_i32_155 dim 1 : vector<8x256xf32>, i32 -> vector<8x256xf32>
    %226 = vector.extract_strided_slice %25 {offsets = [0, 0], sizes = [8, 256], strides = [1, 1]} : vector<16x256xf32> to vector<8x256xf32>
    %227 = arith.mulf %225, %226 : vector<8x256xf32>
    %c48_156 = arith.constant 48 : index
    %c0_157 = arith.constant 0 : index
    %228 = vector.load %arg13[%c48_156, %c0_157] : memref<144x256xf32, #tpu.memory_space<vmem>>, vector<8x256xf32>
    tpu.vector_store %arg13[%c48_156, %c0_157], %227 {strides = array<i32>} : memref<144x256xf32, #tpu.memory_space<vmem>>, vector<8x256xf32>,
    %c240_i32_158 = arith.constant 240 : i32
    %229 = tpu.dynamic_rotate %203 by %c240_i32_158 dim 1 : vector<8x256xf32>, i32 -> vector<8x256xf32>
    %230 = vector.extract_strided_slice %28 {offsets = [0, 0], sizes = [8, 256], strides = [1, 1]} : vector<16x256xf32> to vector<8x256xf32>
    %231 = arith.mulf %229, %230 : vector<8x256xf32>
    %c56_159 = arith.constant 56 : index
    %c0_160 = arith.constant 0 : index
    %232 = vector.load %arg13[%c56_159, %c0_160] : memref<144x256xf32, #tpu.memory_space<vmem>>, vector<8x256xf32>
    tpu.vector_store %arg13[%c56_159, %c0_160], %231 {strides = array<i32>} : memref<144x256xf32, #tpu.memory_space<vmem>>, vector<8x256xf32>,
    %c239_i32_161 = arith.constant 239 : i32
    %233 = tpu.dynamic_rotate %203 by %c239_i32_161 dim 1 : vector<8x256xf32>, i32 -> vector<8x256xf32>
    %234 = vector.extract_strided_slice %31 {offsets = [0, 0], sizes = [8, 256], strides = [1, 1]} : vector<16x256xf32> to vector<8x256xf32>
    %235 = arith.mulf %233, %234 : vector<8x256xf32>
    %c64_162 = arith.constant 64 : index
    %c0_163 = arith.constant 0 : index
    %236 = vector.load %arg13[%c64_162, %c0_163] : memref<144x256xf32, #tpu.memory_space<vmem>>, vector<8x256xf32>
    tpu.vector_store %arg13[%c64_162, %c0_163], %235 {strides = array<i32>} : memref<144x256xf32, #tpu.memory_space<vmem>>, vector<8x256xf32>,
    %c0_164 = arith.constant 0 : index
    %c0_165 = arith.constant 0 : index
    %237 = vector.load %arg13[%c0_164, %c0_165] : memref<144x256xf32, #tpu.memory_space<vmem>>, vector<72x256xf32>
    %c0_166 = arith.constant 0 : index
    %c0_167 = arith.constant 0 : index
    %238 = vector.load %arg10[%c0_166, %c0_167] : memref<16x72xf32, #tpu.memory_space<vmem>>, vector<16x72xf32>
    %cst_168 = arith.constant dense<0.000000e+00> : vector<16x256xf32>
    %239 = tpu.matmul %238, %237, %cst_168 {dimension_numbers = #tpu.dot_dimension_numbers<[1], [0], [0], [1], [0, 0, 1, 1], [], []>} : vector<16x72xf32>, vector<72x256xf32>, vector<16x256xf32> -> vector<16x256xf32>
    %240 = vector.broadcast %7 : vector<16x1xf32> to vector<16x256xf32>
    %241 = arith.addf %239, %240 : vector<16x256xf32>
    %cst_169 = arith.constant 0.000000e+00 : f32
    %242 = vector.broadcast %cst_169 : f32 to vector<16x256xf32>
    %243 = arith.maximumf %241, %242 : vector<16x256xf32>
    %244 = arith.addf %243, %33 : vector<16x256xf32>
    %c0_170 = arith.constant 0 : index
    %c0_171 = arith.constant 0 : index
    %c0_172 = arith.constant 0 : index
    %245 = vector.load %arg11[%c0_170, %c0_171, %c0_172] : memref<1x16x256xf32, #tpu.memory_space<vmem>>, vector<1x16x256xf32>
    %246 = vector.shape_cast %245 : vector<1x16x256xf32> to vector<16x256xf32>
    %247 = vector.shape_cast %244 : vector<16x256xf32> to vector<1x16x256xf32>
    tpu.vector_store %arg11[%c0_170, %c0_171, %c0_172], %247 {strides = array<i32>} : memref<1x16x256xf32, #tpu.memory_space<vmem>>, vector<1x16x256xf32>,
    return
  }
  func.func @transform_0(%arg0: i32) -> (i32, i32, i32) {
    %c0_i32 = arith.constant 0 : i32
    %c0_i32_0 = arith.constant 0 : i32
    %c0_i32_1 = arith.constant 0 : i32
    return %arg0, %c0_i32, %c0_i32_0 : i32, i32, i32
  }
  func.func @transform_1(%arg0: i32) -> (i32, i32) {
    %c0_i32 = arith.constant 0 : i32
    %c0_i32_0 = arith.constant 0 : i32
    %c0_i32_1 = arith.constant 0 : i32
    return %c0_i32, %c0_i32_0 : i32, i32
  }
  func.func @transform_2(%arg0: i32) -> (i32, i32) {
    %c0_i32 = arith.constant 0 : i32
    %c0_i32_0 = arith.constant 0 : i32
    %c0_i32_1 = arith.constant 0 : i32
    return %c0_i32, %c0_i32_0 : i32, i32
  }
  func.func @transform_3(%arg0: i32) -> (i32, i32) {
    %c0_i32 = arith.constant 0 : i32
    %c0_i32_0 = arith.constant 0 : i32
    %c0_i32_1 = arith.constant 0 : i32
    return %c0_i32, %c0_i32_0 : i32, i32
  }
  func.func @transform_4(%arg0: i32) -> (i32, i32) {
    %c0_i32 = arith.constant 0 : i32
    %c0_i32_0 = arith.constant 0 : i32
    %c0_i32_1 = arith.constant 0 : i32
    return %c0_i32, %c0_i32_0 : i32, i32
  }
  func.func @transform_5(%arg0: i32) -> (i32, i32) {
    %c0_i32 = arith.constant 0 : i32
    %c0_i32_0 = arith.constant 0 : i32
    %c0_i32_1 = arith.constant 0 : i32
    return %c0_i32, %c0_i32_0 : i32, i32
  }
  func.func @transform_6(%arg0: i32) -> (i32, i32) {
    %c0_i32 = arith.constant 0 : i32
    %c0_i32_0 = arith.constant 0 : i32
    %c0_i32_1 = arith.constant 0 : i32
    return %c0_i32, %c0_i32_0 : i32, i32
  }
  func.func @transform_7(%arg0: i32) -> (i32, i32) {
    %c0_i32 = arith.constant 0 : i32
    %c0_i32_0 = arith.constant 0 : i32
    %c0_i32_1 = arith.constant 0 : i32
    return %c0_i32, %c0_i32_0 : i32, i32
  }
  func.func @transform_8(%arg0: i32) -> (i32, i32) {
    %c0_i32 = arith.constant 0 : i32
    %c0_i32_0 = arith.constant 0 : i32
    %c0_i32_1 = arith.constant 0 : i32
    return %c0_i32, %c0_i32_0 : i32, i32
  }
  func.func @transform_9(%arg0: i32) -> (i32, i32) {
    %c0_i32 = arith.constant 0 : i32
    %c0_i32_0 = arith.constant 0 : i32
    %c0_i32_1 = arith.constant 0 : i32
    return %c0_i32, %c0_i32_0 : i32, i32
  }
  func.func @transform_10(%arg0: i32) -> (i32, i32, i32) {
    %c0_i32 = arith.constant 0 : i32
    %c0_i32_0 = arith.constant 0 : i32
    %c0_i32_1 = arith.constant 0 : i32
    return %arg0, %c0_i32, %c0_i32_0 : i32, i32, i32
  }
}

</mosaic_0001>

<bundles_post_ra>
// kernel: tpu_custom_call.1
= control target key start
LH: loop header
LB: loop body
LE: loop exit
PB: predicated region body
PF: predicated region fallthrough
CT: control target
= control target key end

     0   :  { %15 = vsyncpa [#allocation5], 0  ;;  %s3103_s0 = inlined_call_operand.vmem [shape: f32[2,16,256], index: 0, kind: input, shape index: {}]   ;;  %s3104_s1 = inlined_call_operand.vmem [shape: f32[16,256], index: 1, kind: input, shape index: {}]   ;;  %s3105_s2 = inlined_call_operand.vmem [shape: f32[1,16], index: 2, kind: input, shape index: {}]   ;;  %s3106_s3 = inlined_call_operand.hbm [shape: f32[2,16], index: 3, kind: input, shape index: {}]   ;;  %s3107_s4 = inlined_call_operand.vmem [shape: f32[16,2], index: 4, kind: input, shape index: {}]   ;;  %s3108_s5 = inlined_call_operand.vmem [shape: f32[80,1], index: 5, kind: input, shape index: {}]   ;;  %s3109_s6 = inlined_call_operand.vmem [shape: f32[8,144], index: 6, kind: input, shape index: {}]   ;;  %s3110_s7 = inlined_call_operand.hbm [shape: f32[8,72], index: 7, kind: input, shape index: {}]   ;;  %s3111_s8 = inlined_call_operand.hbm [shape: f32[8,72], index: 8, kind: input, shape index: {}]   ;;  %s3112_s9 = inlined_call_operand.vmem [shape: f32[16,72], index: 9, kind: input, shape index: {}]   ;;  %s3113_s10 = inlined_call_operand.hbm [shape: f32[2,16,256], index: 10, kind: output, shape index: {}]  }
   0x1   :  { %16 = vsyncpa [#allocation8], 0 }
   0x2   :  { %17 = vsyncpa [#allocation6], 0 }
   0x3   :  { %19 = vsyncpa [#allocation6 + $0x1], 0  ;;  %s2296_s13 = smov 0   ;;  %s2298_s14 = smov 0  }
   0x4   :  { %s2300_s15 = smov 0   ;;  %s2302_s16 = smov 0  }
   0x5 LB: > { %3121 = sst [smem:[#allocation14_spill]] %s2218_s15  ;;  %s2317_s17 = sadd.s32 4294967295, %s2222_s16   ;;  %s2222_s16 = sphi %s2302_s16, %s3138_s16   ;;  %s2218_s15 = sphi %s2300_s15, %s3140_s15   ;;  %s2214_s14 = sphi %s2298_s14, %s3142_s14   ;;  %s2210_s13 = sphi %s2296_s13, %s3141_s13  }
   0x6   : > { %s1825_s18 = sadd.s32 4294967294, %s2222_s16   ;;  %s2321_s19 = sadd.s32 1, %s2222_s16  }
   0x7   : > { %3122 = sst [smem:[#allocation15_spill]] %s2321_s19  ;;  %s247_s20 = sadd.s32 1, %s2218_s15 }
   0x8   : > { %s244_s21 = ssub.s32 %s2222_s16, %s2321_s19  ;;  %p257_p0 = scmp.ne.s32.totalorder %s2218_s15, %s2214_s14 }
   0x9   : > { %p245_p1 = scmp.eq.s32.totalorder %s244_s21, 0  ;;  %p258_p2 = scmp.eq.s32.totalorder %s2317_s17, 1 }
   0xa   : > { %p263_p3 = scmp.ne.s32.totalorder %s2214_s14, %s2210_s13  ;;  %p264_p4 = scmp.eq.s32.totalorder %s1825_s18, 1 }
   0xb   : > { %s2332_s22 = scalar_select %p245_p1, %s2218_s15, %s247_s20  }
   0xc   : > { %p2334_p5 = por %p258_p2, %p257_p0  ;;  %p2338_p6 = por %p264_p4, %p263_p3 }
   0xd   : > { %3123 = sst [smem:[#allocation16_spill]] %s2332_s22  ;;  %p1826_p7 = scmp.ge.s32.totalorder %s2222_s16, 1 }
   0xe   : > { %s3124_s23 = scalar_select %p2334_p5, 1, 0 }
   0xf   : > { %s3125_s24 = scalar_select %p2338_p6, 1, 0 }
  0x10   : > { %p271_p8 = scmp.lt.s32.totalorder %s2222_s16, 3  ;;  %p3115_p9 = scmp.eq.s32.totalorder %s2317_s17, 0 }
  0x11   : > { %3126 = sst [smem:[#allocation17_spill]] %s3125_s24  ;;  %s2224_s26 = smov [#allocation7]  }
  0x12   : > { %p2345_p10 = pnand %p1826_p7, %p271_p8  ;;  %s310_s27 = sshll.u32 %s2224_s26, 4  ;;  %s311_s27 = int_to_ptr.vmem [resolvable:$true] %s310_s27 }
  0x13   : > { %s2225_s28 = smov [#allocation4]   ;;  %s2226_s11 = smov [#allocation9]  }
  0x14   : > { %s3127_s25 = scalar_select %p2345_p10, 1, 0 }
  0x15   : > { %p1985_p11 = pneg %p2345_p10  ;;  %s290_s29 = sshll.u32 %s2225_s28, 4  ;;  %s2357_s29 = int_to_ptr.vmem [resolvable:$true] %s290_s29 }
  0x16   : > { %s321_s12 = sshll.u32 %s2226_s11, 4  ;;  %s2068_s21 = scalar_lea.hbm %s3110_s7, 128  ;;  %s2359_s12 = int_to_ptr.vmem [resolvable:$true] %s321_s12 }
  0x17   : > { %p2353_p12 = pnand %p3115_p9, %p1985_p11  ;;  %p2069_p13 = scmp.ne.s32.totalorder %s3110_s7, %s2068_s21 }
  0x18   : > { %p2075_p3 = scmp.lt.u32.totalorder %s2068_s21, %s3110_s7 }
  0x19   : > { %p2369_p0 = pneg %p2353_p12 }
  0x1b   : > { %p2071_p1 = pnand %p2369_p0, %p2069_p13 }
  0x1d   : > { %p2072_p2 = pneg %p2071_p1 }
  0x1f   : > { %p2077_p4 = pnand %p2075_p3, %p2072_p2 }
  0x21   : > { %2080 = shalt.err (!%p2077_p4)
}
  0x22   : > { %s2081_s18 = scalar_lea.vmem %s311_s27, 128  ;;  %p2089_p9 = scmp.lt.s32.totalorder %s311_s27, %s311_s27 }
  0x23   : > { %p2082_p7 = scmp.ne.s32.totalorder %s311_s27, %s2081_s18  ;;  %p2090_p6 = scmp.lt.s32.totalorder %s2081_s18, %s2081_s18 }
  0x25   : > { %p2084_p8 = pnand %p2082_p7, %p2369_p0  ;;  %p2091_p5 = por %p2090_p6, %p2089_p9 }
  0x27   : > { %p2085_p11 = pneg %p2084_p8 }
  0x29   : > { %p2092_p10 = pnand %p2091_p5, %p2085_p11 }
  0x2b   : > { %2095 = shalt.err (!%p2092_p10)
}
  0x2c   : > { %1991 = dma.hbm_to_vmem [thread:$0]  (!%p2353_p12), %s3110_s7, 128, %s311_s27, [#allocation8]  }
  0x2d   : > { %s2096_s26 = scalar_lea.hbm %s3106_s3, 32 }
  0x2e   : > { %p2097_p13 = scmp.ne.s32.totalorder %s3106_s3, %s2096_s26  ;;  %p2103_p5 = scmp.lt.u32.totalorder %s2096_s26, %s3106_s3 }
  0x30   : > { %p2099_p1 = pnand %p2097_p13, %p2369_p0 }
  0x32   : > { %p2100_p6 = pneg %p2099_p1 }
  0x34   : > { %p2105_p9 = pnand %p2103_p5, %p2100_p6 }
  0x36   : > { %2108 = shalt.err (!%p2105_p9)
}
  0x37   : > { %s2109_s27 = scalar_lea.vmem %s2357_s29, 32  ;;  %p2117_p4 = scmp.lt.s32.totalorder %s2357_s29, %s2357_s29 }
  0x38   : > { %p2110_p10 = scmp.ne.s32.totalorder %s2357_s29, %s2109_s27  ;;  %p2118_p7 = scmp.lt.s32.totalorder %s2109_s27, %s2109_s27 }
  0x3a   : > { %p2112_p2 = pnand %p2110_p10, %p2369_p0  ;;  %p2119_p8 = por %p2118_p7, %p2117_p4 }
  0x3c   : > { %p2113_p3 = pneg %p2112_p2 }
  0x3e   : > { %p2120_p11 = pnand %p2119_p8, %p2113_p3 }
  0x40   : > { %2123 = shalt.err (!%p2120_p11)
}
  0x41   : > { %1988 = dma.hbm_to_vmem [thread:$0]  (!%p2353_p12), %s3106_s3, 32, %s2357_s29, [#allocation5]  }
  0x42   : > { %s2124_s15 = scalar_lea.hbm %s3111_s8, 128 }
  0x43   : > { %p2125_p13 = scmp.ne.s32.totalorder %s3111_s8, %s2124_s15  ;;  %p2131_p5 = scmp.lt.u32.totalorder %s2124_s15, %s3111_s8 }
  0x45   : > { %p2127_p1 = pnand %p2125_p13, %p2369_p0 }
  0x47   : > { %p2128_p6 = pneg %p2127_p1 }
  0x49   : > { %p2133_p9 = pnand %p2131_p5, %p2128_p6 }
  0x4b   : > { %2136 = shalt.err (!%p2133_p9)
}
  0x4c   : > { %s2137_s29 = scalar_lea.vmem %s2359_s12, 128  ;;  %p2145_p4 = scmp.lt.s32.totalorder %s2359_s12, %s2359_s12 }
  0x4d   : > { %p2138_p10 = scmp.ne.s32.totalorder %s2359_s12, %s2137_s29  ;;  %p2146_p7 = scmp.lt.s32.totalorder %s2137_s29, %s2137_s29 }
  0x4f   : > { %p2140_p2 = pnand %p2138_p10, %p2369_p0  ;;  %p2147_p8 = por %p2146_p7, %p2145_p4 }
  0x51   : > { %p2141_p3 = pneg %p2140_p2 }
  0x53   : > { %p2148_p11 = pnand %p2147_p8, %p2141_p3 }
  0x55   : > { %2151 = shalt.err (!%p2148_p11)
}
  0x56   : > { %1994 = dma.hbm_to_vmem [thread:$0]  (!%p2353_p12), %s3111_s8, 128, %s2359_s12, [#allocation8]  }
  0x57   : > { %p3130_p13 = scmp.ne.s32.totalorder %s3127_s25, 0 }
  0x58   : > { %p3131_p1 = scmp.eq.s32.totalorder (!%p3130_p13), %s2317_s17, 0 }
  0x59   : > { %345 = sbr.rel (%p3130_p13) target bundleno = 2953 (0xb89), region = 60 }
  0x60   : > { %2197 = dma.done.wait (%p3131_p1), [#allocation5], 32   ;;  %p3132_p0 = pmov %p3131_p1 }
  0x62   : > { %2199 = vsyncadd (%p3132_p0), [#allocation5], 4294967264  ;;  %p3133_p6 = pmov %p3132_p0 }
  0x63   : > { %p3134_p5 = pmov %p3132_p0 }
  0x64   : > { %2201 = dma.done.wait (%p3133_p6), [#allocation8], 256  }
  0x65   : > { %2203 = vsyncadd (%p3134_p5), [#allocation8], 4294967040  ;;  %p391_p9 = scmp.lt.s32.totalorder %s2317_s17, 1  ;;  %v2227_v0 = vmov 0.0   ;;  %v513_v7 = vld [vmem:[%s3105_s2] sm:$0x1]  ;;  %v408_v24 = vlaneseq }
  0x66   : > { %582 = vmatprep.mubr.f32.mxu0 %v2227_v0  ;;  %vm514_vm0 = vcmask 130048   ;;  %vm589_vm1 = vcmask 1040384   ;;  %v2228_v38 = vmov 0.0|0.0   ;;  %vm2229_vm2 = vmmov 0   ;;  %v627_v42 = vld [vmem:[#allocation4] sm:$0x3] }
  0x67   : > { %s392_s25 = scalar_select %p391_p9, %s2317_s17, 1  ;;  %v2474_v25 = vshrl.u32 %v408_v24, 7  ;;  %v727_v43 = vld [vmem:[%s3107_s4] sm:$0xff]  ;;  %vm729_vm3 = vcmask 15360   ;;  %vm701_vm4 = vcmask 1024   ;;  %vm736_vm5 = vcmask 1041408  }
  0x68   : > { %v396_v44 = vld [vmem:[%s3108_s5] sm:$0x3]  ;;  %s2231_s15 = smov 17   ;;  %s2232_s21 = smov 16   ;;  %vm1244_vm14 = vcmask 588800  }
  0x69   : > { %s1860_s30 = sshll.u32 %s392_s25, 5  ;;  %v2477_v26 = vsub.s32 0, %v2474_v25  ;;  %s2233_s26 = smov 15  }
  0x6a   : > { %s2447_s24 = scalar_lea.vmem %s3103_s0, %s1860_s30  ;;  %s2234_s11 = smov 1  }
  0x6b   : > { %v2450_v1 = vld [vmem:[%s2447_s24 + $0x8] sm:$0xff]  ;;  %v2453_v2 = vld [vmem:[%s2447_s24 + $0x18] sm:$0xff]  ;;  %v2456_v3 = vld [vmem:[%s2447_s24] sm:$0xff]  ;;  %s2235_s18 = smov 127   ;;  %s2236_s29 = smov 113  }
  0x6c   : > { %v1880_v4 = vpack.c.bf16 %v2453_v2, %v2450_v1  ;;  %v2461_v5 = vld [vmem:[%s2447_s24 + $0x10] sm:$0xff]  ;;  %s2237_s27 = smov 112   ;;  %s2238_s19 = smov 111  }
  0x6d   : > { %v1882_v6 = vpack.c.bf16 %v2461_v5, %v2456_v3  ;;  %s388_s28 = sand.u32 1, %s2214_s14   ;;  %s1861_s30 = sshll.u32 %s2317_s17, 9 }
  0x6e   : > { %1881 = vmatprep.subr.bf16.mxu0 %v1880_v4  ;;  %s1835_s22 = sshll.u32 %s388_s28, 5  ;;  %s3061_s17 = scalar_lea.sflag [#allocation6], %s388_s28 }
  0x6f   : > { %1883 = vmatpush1.bf16.msra.mxu0 %v1882_v6  ;;  %s390_s20 = scalar_lea.vmem [#allocation10], %s1835_s22  ;;  %p3135_p10 = scmp.ne.s32.totalorder %s3124_s23, 0 }
  0x70   : > { %1884 = vmatprep.subr.bf16.mxu0 %v2228_v38  ;;  %v2595_v38 = vand.u32 127, %v408_v24  ;;  %s1732_s25 = sshll.u32 %s390_s20, 4  ;;  %s3050_s25 = int_to_ptr.vmem [resolvable:$true] %s1732_s25 }
  0x72   : > { %1845 = vmatmul.mubr.msk.f32.vlgmr.msra.gmra.mrb[0].mxu0 %vm514_vm0, %v513_v7  ;;  %vm851_vm6 = vcmp.lt.s32.totalorder %v2595_v38, 17  ;;  %vm872_vm7 = vcmp.lt.s32.totalorder %v2595_v38, 16  ;;  %vm893_vm8 = vcmp.lt.s32.totalorder %v2595_v38, 15  ;;  %vm914_vm9 = vcmp.lt.s32.totalorder %v2595_v38, 1 }
  0x73   : > { %1872 = vmatprep.mubr.msk.f32.mxu0 %vm2229_vm2, %v2227_v0  ;;  %vm939_vm10 = vcmp.lt.s32.totalorder %v2595_v38, 127  ;;  %vm960_vm11 = vcmp.lt.s32.totalorder %v2595_v38, 113  ;;  %vm981_vm12 = vcmp.lt.s32.totalorder %v2595_v38, 112  ;;  %vm1002_vm13 = vcmp.lt.s32.totalorder %v2595_v38, 111  ;;  %v1612_v38 = vld [vmem:[%s3112_s9 + $0x8] sm:$0xff] }
 0x145   : > { %v584_v8 = vpop.f32.mrb[0].mxu0 }
 0x146   : > { %v586_v9 = vpop.f32.mrb[1].mxu0  ;;  %v590_v10 = vsel %vm589_vm1, %v584_v8, -inf }
 0x147   : > { %v591_v11 = vsel %vm589_vm1, %v586_v9, -inf }
 0x148   : > { %v592_v12 = vmax.f32 %v590_v10, %v591_v11  ;;  %v398_v11 = vld [vmem:[%s3108_s5 + $0x10] sm:$0x3] }
 0x14a   : > { %593 = vmax.xlane.f32.xlu0 %v592_v12 }
 0x1d7   : > { %v594_v13 = vpop.xlane.xlu0 %593 }
 0x1d8   : > { %v595_v14 = vsub.f32 %v584_v8, %v594_v13  ;;  %v596_v15 = vsub.f32 %v586_v9, %v594_v13  ;;  %v397_v9 = vld [vmem:[%s3108_s5 + $0x8] sm:$0x3] }
 0x1da   : > { %v597_v16 = vmul.f32 1.442695, %v595_v14  ;;  %v599_v17 = vmul.f32 1.442695, %v596_v15  ;;  %v728_v15 = vld [vmem:[%s3107_s4 + $0x8] sm:$0xff] }
 0x1dc   : > { %2056 = vpow2.f32 %v597_v16  ;;  %v2230_v16 = vmov 0  }
 0x1dd   : > { %2058 = vpow2.f32 %v599_v17  ;;  %2055 = vset.pattern.permute.xlu1 %v2230_v16  ;;  %2054 = vset.pattern.permute.xlu0 %v2230_v16  ;;  %v400_v17 = vld [vmem:[%s3108_s5 + $0x20] sm:$0xff] }
 0x1e6   : > { %v2057_v18 = vpop.eup %2056 }
 0x1e7   : > { %v2059_v19 = vpop.eup %2058  ;;  %v601_v20 = vsel %vm589_vm1, %v2057_v18, 0.0 }
 0x1e8   : > { %v602_v21 = vsel %vm589_vm1, %v2059_v19, 0.0 }
 0x1e9   : > { %v603_v22 = vadd.f32 %v602_v21, %v601_v20 }
 0x1eb   : > { %604 = vadd.xlane.f32.xlu0 %v603_v22 }
 0x278   : > { %v605_v23 = vpop.xlane.xlu0 %604 }
 0x279   : > { %2060 = vrcp.f32 %v605_v23  ;;  %v817_v23 = vmul.f32 2.0, %v2461_v5 }
 0x283   : > { %v2061_v27 = vpop.eup %2060 }
 0x284   : > { %v607_v28 = vmul.f32 %v2061_v27, %v2057_v18  ;;  %v608_v29 = vmul.f32 %v2061_v27, %v2059_v19  ;;  %v399_v18 = vld [vmem:[%s3108_s5 + $0x18] sm:$0xff]  ;;  %v818_v27 = vmul.f32 2.0, %v2453_v2 }
 0x286   : > { %v612_v30 = vrot.slane %v607_v28, %v2477_v26  ;;  %v616_v31 = vrot.slane %v608_v29, %v2477_v26 }
 0x288   : > { %v617_v32 = vmul.f32 %v612_v30, %v2456_v3  ;;  %v618_v33 = vmul.f32 %v616_v31, %v2450_v1  ;;  %v619_v35 = vmul.f32 %v612_v30, %v2461_v5  ;;  %v620_v36 = vmul.f32 %v616_v31, %v2453_v2 }
 0x289   : > { %v815_v2 = vmul.f32 2.0, %v2456_v3  ;;  %v816_v31 = vmul.f32 2.0, %v2450_v1  ;;  %v1052_v1 = vld [vmem:[%s3109_s6 + $0x8] sm:$0xff] }
 0x28a   : > { %v621_v34 = vadd.f32 %v618_v33, %v617_v32  ;;  %v624_v37 = vadd.f32 %v620_v36, %v619_v35  ;;  %1850 = vmatprep.mubr.msk.f32.mxu1 %vm514_vm0, %v1052_v1  ;;  %v401_v3 = vld [vmem:[%s3108_s5 + $0x28] sm:$0xff] }
 0x28c   : > { %622 = vadd.xlane.f32.xlu1 %v621_v34 }
 0x290   : > { %625 = vadd.xlane.f32.xlu1 %v624_v37 }
 0x319   : > { %v623_v39 = vpop.xlane.xlu1 %622 }
 0x31d   : > { %v626_v40 = vpop.xlane.xlu1 %625 }
 0x31e   : > { %v1885_v41 = vpack.c.bf16 %v626_v40, %v623_v39 }
 0x320   : > { %1886 = vmatpush3.bf16.msra.mxu0 %v1885_v41  ;;  %v2598_v41 = vsub.s32 1, %v2474_v25 }
 0x323   : > { %1873 = vmatmul.mubr.msk.f32.vlgmr.msra.gmra.mrb[2].mxu0 %vm514_vm0, %v627_v42  ;;  %v406_v42 = vld [vmem:[%s3104_s1] ss:$8 sm:$0x3] }
 0x324   : > { %1877 = vmatprep.mubr.msk.f32.mxu0 %vm729_vm3, %v727_v43 }
 0x3f6   : > { %v697_v45 = vpop.f32.mrb[2].mxu0 }
 0x3f7   : > { %v698_v46 = vadd.f32 %v697_v45, %v396_v44  ;;  %v1874_v47 = vpop.f32.mrb[3].mxu0  ;;  %v2605_v44 = vrot.slane %v406_v42, %v2477_v26 }
 0x3f9   : > { %v702_v48 = vsel %vm701_vm4, %v698_v46, 0.0 }
 0x3fa   : > { %v703_v49 = vrot.slane %v702_v48, 4 }
 0x3fc   : > { %v704_v50 = vadd.f32 %v703_v49, %v702_v48 }
 0x3fe   : > { %v705_v51 = vrot.slane %v704_v50, 2 }
 0x400   : > { %v706_v52 = vadd.f32 %v705_v51, %v704_v50 }
 0x402   : > { %v707_v53 = vrot.slane %v706_v52, 1 }
 0x404   : > { %v708_v54 = vadd.f32 %v707_v53, %v706_v52 }
 0x406   : > { %v710_v55 = vmul.f32 0.5, %v708_v54  ;;  %v1838_v54 = vld [vmem:[%s3104_s1 + $0x1] ss:$8 sm:$0x3] }
 0x408   : > { %v711_v56 = vsub.f32 %v698_v46, %v710_v55  ;;  %v2608_v46 = vrot.slane %v406_v42, %v2598_v41 }
 0x40a   : > { %v712_v57 = vmul.f32 %v711_v56, %v711_v56 }
 0x40c   : > { %v713_v58 = vsel %vm701_vm4, %v712_v57, 0.0 }
 0x40d   : > { %v714_v59 = vrot.slane %v713_v58, 4 }
 0x40f   : > { %v715_v60 = vadd.f32 %v714_v59, %v713_v58  ;;  %v2627_v59 = vrot.slane %v1838_v54, %v2477_v26 }
 0x411   : > { %v716_v61 = vrot.slane %v715_v60, 2 }
 0x413   : > { %v717_v62 = vadd.f32 %v716_v61, %v715_v60  ;;  %v2630_v60 = vrot.slane %v1838_v54, %v2598_v41 }
 0x415   : > { %v718_v63 = vrot.slane %v717_v62, 1 }
 0x417   : > { %v719_v4 = vadd.f32 %v718_v63, %v717_v62 }
 0x419   : > { %v720_v6 = vmul.f32 0.5, %v719_v4 }
 0x41b   : > { %v721_v7 = vadd.f32 1e-05, %v720_v6 }
 0x41d   : > { %2062 = vrsqrt.f32 %v721_v7 }
 0x427   : > { %v2063_v8 = vpop.eup %2062 }
 0x428   : > { %v723_v10 = vmul.f32 %v2063_v8, %v711_v56 }
 0x42a   : > { %v724_v12 = vmul.f32 %v723_v10, %v397_v9 }
 0x42c   : > { %v725_v13 = vadd.f32 %v724_v12, %v398_v11  ;;  %v1839_v12 = vld [vmem:[%s3104_s1 + $0x2] ss:$8 sm:$0x3] }
 0x42d   : > { %v2649_v16 = vrot.slane %v1839_v12, %v2477_v26 }
 0x42e   : > { %v726_v14 = vmax.f32 %v725_v13, 0.0 }
 0x430   : > { %1875 = vmatprep.subr.msk.mxu0 %vm736_vm5, %v726_v14 }
 0x431   : > { %1876 = vmatpush3.msk.msra.mxu0 %vm736_vm5, %v726_v14 }
 0x432   : > { %1878 = vmatmul.mubr.msk.f32.vlgmr.msra.gmra.mrb[4].mxu0 %vm729_vm3, %v728_v15 }
 0x433   : > { %1312 = vmatprep.mubr.f32.mxu0 %v2227_v0 }
 0x505   : > { %v1879_v19 = vpop.f32.mrb[4].mxu0 }
 0x506   : > { %v812_v20 = vadd.f32 %v1879_v19, %v400_v17  ;;  %v806_v21 = vpop.f32.mrb[5].mxu0  ;;  %v2652_v17 = vrot.slane %v1839_v12, %v2598_v41 }
 0x507   : > { %v807_v22 = vadd.f32 %v806_v21, %v399_v18 }
 0x508   : > { %826 = vperm.xlu1 %2055, %v812_v20  }
 0x509   : > { %821 = vperm.xlu0 %2054, %v807_v22  }
 0x587   : > { %v827_v28 = vpop.permute.xlu1 %826 }
 0x588   : > { %v2513_v29 = vadd.f32 %v827_v28, %v817_v23  ;;  %v2515_v30 = vadd.f32 %v827_v28, %v818_v27  ;;  %v822_v5 = vpop.permute.xlu0 %821 }
 0x589   : > { %v2531_v32 = vadd.f32 %v822_v5, %v815_v2  ;;  %v2537_v33 = vadd.f32 %v822_v5, %v816_v31  ;;  %v1840_v31 = vld [vmem:[%s3104_s1 + $0x3] ss:$8 sm:$0x3] }
 0x58a   : > { %843 = vrot.lane.b32.xlu1 %v2513_v29, %s2231_s15  ;;  %870 = vrot.lane.b32.xlu0 %v2515_v30, %s2232_s21 }
 0x58e   : > { %847 = vrot.lane.b32.xlu1 %v2515_v30, %s2231_s15  ;;  %887 = vrot.lane.b32.xlu0 %v2513_v29, %s2233_s26 }
 0x592   : > { %866 = vrot.lane.b32.xlu1 %v2513_v29, %s2232_s21  ;;  %891 = vrot.lane.b32.xlu0 %v2515_v30, %s2233_s26 }
 0x596   : > { %908 = vrot.lane.b32.xlu0 %v2513_v29, %s2234_s11  ;;  %841 = vrot.lane.b32.xlu1 %v2531_v32, %s2231_s15 }
 0x59a   : > { %912 = vrot.lane.b32.xlu0 %v2515_v30, %s2234_s11  ;;  %845 = vrot.lane.b32.xlu1 %v2537_v33, %s2231_s15 }
 0x59e   : > { %933 = vrot.lane.b32.xlu0 %v2513_v29, %s2235_s18  ;;  %864 = vrot.lane.b32.xlu1 %v2531_v32, %s2232_s21 }
 0x5a2   : > { %937 = vrot.lane.b32.xlu0 %v2515_v30, %s2235_s18  ;;  %868 = vrot.lane.b32.xlu1 %v2537_v33, %s2232_s21 }
 0x5a6   : > { %954 = vrot.lane.b32.xlu0 %v2513_v29, %s2236_s29  ;;  %885 = vrot.lane.b32.xlu1 %v2531_v32, %s2233_s26 }
 0x5aa   : > { %958 = vrot.lane.b32.xlu0 %v2515_v30, %s2236_s29  ;;  %889 = vrot.lane.b32.xlu1 %v2537_v33, %s2233_s26 }
 0x5ae   : > { %975 = vrot.lane.b32.xlu0 %v2513_v29, %s2237_s27  ;;  %906 = vrot.lane.b32.xlu1 %v2531_v32, %s2234_s11 }
 0x5b2   : > { %979 = vrot.lane.b32.xlu0 %v2515_v30, %s2237_s27  ;;  %910 = vrot.lane.b32.xlu1 %v2537_v33, %s2234_s11 }
 0x5b6   : > { %996 = vrot.lane.b32.xlu0 %v2513_v29, %s2238_s19  ;;  %931 = vrot.lane.b32.xlu1 %v2531_v32, %s2235_s18 }
 0x5ba   : > { %1000 = vrot.lane.b32.xlu0 %v2515_v30, %s2238_s19  ;;  %935 = vrot.lane.b32.xlu1 %v2537_v33, %s2235_s18 }
 0x5be   : > { %952 = vrot.lane.b32.xlu1 %v2531_v32, %s2236_s29 }
 0x5c2   : > { %956 = vrot.lane.b32.xlu1 %v2537_v33, %s2236_s29 }
 0x5c6   : > { %973 = vrot.lane.b32.xlu1 %v2531_v32, %s2237_s27 }
 0x5ca   : > { %977 = vrot.lane.b32.xlu1 %v2537_v33, %s2237_s27 }
 0x5ce   : > { %994 = vrot.lane.b32.xlu1 %v2531_v32, %s2238_s19 }
 0x5d2   : > { %998 = vrot.lane.b32.xlu1 %v2537_v33, %s2238_s19 }
 0x5d6   : > { %1055 = vperm.xlu1 %2055, %v401_v3  }
 0x5fc   : > { %v844_v34 = vpop.permute.xlu1 %843  ;;  %v871_v35 = vpop.permute.xlu0 %870 }
 0x600   : > { %v848_v36 = vpop.permute.xlu1 %847  ;;  %v888_v37 = vpop.permute.xlu0 %887 }
 0x601   : > { %v853_v24 = vsel %vm851_vm6, %v844_v34, %v848_v36  ;;  %v855_v25 = vsel %vm851_vm6, %v848_v36, %v844_v34  ;;  %v2674_v36 = vrot.slane %v1840_v31, %v2598_v41 }
 0x602   : > { %v858_v50 = vmul.f32 %v855_v25, %v2605_v44  ;;  %v859_v53 = vmul.f32 %v853_v24, %v2608_v46 }
 0x604   : > { %v867_v39 = vpop.permute.xlu1 %866  ;;  %v892_v40 = vpop.permute.xlu0 %891 }
 0x605   : > { %v874_v61 = vsel %vm872_vm7, %v867_v39, %v871_v35  ;;  %v876_v62 = vsel %vm872_vm7, %v871_v35, %v867_v39  ;;  %v895_v18 = vsel %vm893_vm8, %v888_v37, %v892_v40  ;;  %v897_v19 = vsel %vm893_vm8, %v892_v40, %v888_v37 }
 0x606   : > { %v879_v7 = vmul.f32 %v876_v62, %v2627_v59  ;;  %v880_v8 = vmul.f32 %v874_v61, %v2630_v60  ;;  %v900_v27 = vmul.f32 %v897_v19, %v2649_v16  ;;  %v901_v28 = vmul.f32 %v895_v18, %v2652_v17 }
 0x607   : > { %v2671_v35 = vrot.slane %v1840_v31, %v2477_v26 }
 0x608   : > { %v842_v43 = vpop.permute.xlu1 %841  ;;  %v909_v45 = vpop.permute.xlu0 %908 }
 0x60c   : > { %v846_v47 = vpop.permute.xlu1 %845  ;;  %v913_v55 = vpop.permute.xlu0 %912 }
 0x60d   : > { %v852_v48 = vsel %vm851_vm6, %v842_v43, %v846_v47  ;;  %v854_v49 = vsel %vm851_vm6, %v846_v47, %v842_v43  ;;  %v916_v39 = vsel %vm914_vm9, %v909_v45, %v913_v55  ;;  %v918_v40 = vsel %vm914_vm9, %v913_v55, %v909_v45  ;;  %v1841_v45 = vld [vmem:[%s3104_s1 + $0x5] ss:$8 sm:$0x3] }
 0x60e   : > { %v856_v51 = vmul.f32 %v854_v49, %v2605_v44  ;;  %v857_v52 = vmul.f32 %v852_v48, %v2608_v46  ;;  %v921_v25 = vmul.f32 %v918_v40, %v2671_v35  ;;  %v922_v47 = vmul.f32 %v916_v39, %v2674_v36 }
 0x60f   : > { %v2693_v54 = vrot.slane %v1841_v45, %v2477_v26  ;;  %v2696_v55 = vrot.slane %v1841_v45, %v2598_v41 }
 0x610   : > { %v865_v56 = vpop.permute.xlu1 %864  ;;  %v1887_v57 = vpack.c.bf16 %v859_v53, %v857_v52  ;;  %v1889_v58 = vpack.c.bf16 %v858_v50, %v856_v51  ;;  %v934_v9 = vpop.permute.xlu0 %933 }
 0x612   : > { %1888 = vmatprep.subr.bf16.mxu1 %v1887_v57 }
 0x613   : > { %1890 = vmatpush1.bf16.msra.mxu1 %v1889_v58 }
 0x614   : > { %v869_v63 = vpop.permute.xlu1 %868  ;;  %v938_v20 = vpop.permute.xlu0 %937 }
 0x615   : > { %v873_v4 = vsel %vm872_vm7, %v865_v56, %v869_v63  ;;  %v875_v6 = vsel %vm872_vm7, %v869_v63, %v865_v56  ;;  %v1903_v56 = vpack.c.bf16 %v2515_v30, %v2537_v33  ;;  %v941_v57 = vsel %vm939_vm10, %v934_v9, %v938_v20 }
 0x616   : > { %v877_v10 = vmul.f32 %v875_v6, %v2627_v59  ;;  %v878_v11 = vmul.f32 %v873_v4, %v2630_v60  ;;  %v943_v58 = vsel %vm939_vm10, %v938_v20, %v934_v9  ;;  %v1905_v4 = vpack.c.bf16 %v2513_v29, %v2531_v32  ;;  %v1842_v9 = vld [vmem:[%s3104_s1 + $0x6] ss:$8 sm:$0x3] }
 0x617   : > { %v946_v30 = vmul.f32 %v941_v57, %v2693_v54  ;;  %v947_v33 = vmul.f32 %v943_v58, %v2696_v55  ;;  %v2719_v29 = vrot.slane %v1842_v9, %v2477_v26  ;;  %v2722_v32 = vrot.slane %v1842_v9, %v2598_v41 }
 0x618   : > { %v886_v13 = vpop.permute.xlu1 %885  ;;  %v1891_v14 = vpack.c.bf16 %v880_v8, %v878_v11  ;;  %v1893_v15 = vpack.c.bf16 %v879_v7, %v877_v10  ;;  %v955_v37 = vpop.permute.xlu0 %954 }
 0x61a   : > { %1892 = vmatprep.subr.bf16.mxu1 %v1891_v14 }
 0x61b   : > { %1894 = vmatpush1.bf16.msra.mxu1 %v1893_v15 }
 0x61c   : > { %v890_v21 = vpop.permute.xlu1 %889  ;;  %v959_v50 = vpop.permute.xlu0 %958 }
 0x61d   : > { %v894_v22 = vsel %vm893_vm8, %v886_v13, %v890_v21  ;;  %v896_v23 = vsel %vm893_vm8, %v890_v21, %v886_v13  ;;  %v962_v13 = vsel %vm960_vm11, %v955_v37, %v959_v50  ;;  %v964_v14 = vsel %vm960_vm11, %v959_v50, %v955_v37 }
 0x61e   : > { %v898_v2 = vmul.f32 %v896_v23, %v2649_v16  ;;  %v899_v5 = vmul.f32 %v894_v22, %v2652_v17  ;;  %v967_v21 = vmul.f32 %v962_v13, %v2719_v29  ;;  %v968_v22 = vmul.f32 %v964_v14, %v2722_v32 }
 0x620   : > { %v907_v1 = vpop.permute.xlu1 %906  ;;  %v1895_v3 = vpack.c.bf16 %v901_v28, %v899_v5  ;;  %v1897_v34 = vpack.c.bf16 %v900_v27, %v898_v2  ;;  %v976_v6 = vpop.permute.xlu0 %975  ;;  %v1843_v28 = vld [vmem:[%s3104_s1 + $0x7] ss:$8 sm:$0x3] }
 0x622   : > { %1896 = vmatprep.subr.bf16.mxu1 %v1895_v3  ;;  %v2744_v3 = vrot.slane %v1843_v28, %v2598_v41 }
 0x623   : > { %1898 = vmatpush1.bf16.msra.mxu1 %v1897_v34 }
 0x624   : > { %v911_v42 = vpop.permute.xlu1 %910  ;;  %v980_v15 = vpop.permute.xlu0 %979 }
 0x625   : > { %v915_v43 = vsel %vm914_vm9, %v907_v1, %v911_v42  ;;  %v917_v24 = vsel %vm914_vm9, %v911_v42, %v907_v1  ;;  %v2741_v1 = vrot.slane %v1843_v28, %v2477_v26  ;;  %v983_v37 = vsel %vm981_vm12, %v976_v6, %v980_v15 }
 0x626   : > { %v919_v48 = vmul.f32 %v917_v24, %v2671_v35  ;;  %v920_v49 = vmul.f32 %v915_v43, %v2674_v36  ;;  %v985_v39 = vsel %vm981_vm12, %v980_v15, %v976_v6  ;;  %v402_v15 = vld [vmem:[%s3108_s5 + $0x30] sm:$0xff] }
 0x627   : > { %v988_v24 = vmul.f32 %v983_v37, %v2741_v1 }
 0x628   : > { %v932_v51 = vpop.permute.xlu1 %931  ;;  %v1899_v52 = vpack.c.bf16 %v922_v47, %v920_v49  ;;  %v1901_v53 = vpack.c.bf16 %v921_v25, %v919_v48  ;;  %v997_v34 = vpop.permute.xlu0 %996  ;;  %v989_v25 = vmul.f32 %v985_v39, %v2744_v3  ;;  %v1844_v49 = vld [vmem:[%s3104_s1 + $0x10] ss:$8 sm:$0x3] }
 0x62a   : > { %1900 = vmatprep.subr.bf16.mxu1 %v1899_v52 }
 0x62b   : > { %1902 = vmatpush1.bf16.msra.mxu1 %v1901_v53  ;;  %v2763_v53 = vrot.slane %v1844_v49, %v2477_v26 }
 0x62c   : > { %v936_v61 = vpop.permute.xlu1 %935  ;;  %1904 = vmatprep.subr.bf16.mxu1 %v1903_v56  ;;  %v1001_v45 = vpop.permute.xlu0 %1000  ;;  %v2766_v56 = vrot.slane %v1844_v49, %v2598_v41 }
 0x62d   : > { %v940_v62 = vsel %vm939_vm10, %v932_v51, %v936_v61  ;;  %v942_v63 = vsel %vm939_vm10, %v936_v61, %v932_v51  ;;  %v1004_v57 = vsel %vm1002_vm13, %v997_v34, %v1001_v45  ;;  %v1006_v58 = vsel %vm1002_vm13, %v1001_v45, %v997_v34 }
 0x62e   : > { %v944_v7 = vmul.f32 %v940_v62, %v2693_v54  ;;  %v945_v8 = vmul.f32 %v942_v63, %v2696_v55  ;;  %v1009_v26 = vmul.f32 %v1004_v57, %v2763_v53  ;;  %v1010_v41 = vmul.f32 %v1006_v58, %v2766_v56 }
 0x62f   : > { %1906 = vmatpush1.bf16.msra.mxu1 %v1905_v4 }
 0x630   : > { %v953_v10 = vpop.permute.xlu1 %952  ;;  %v1907_v11 = vpack.c.bf16 %v947_v33, %v945_v8  ;;  %v1909_v12 = vpack.c.bf16 %v946_v30, %v944_v7  ;;  %v1051_v7 = vld [vmem:[%s3109_s6] sm:$0xff] }
 0x632   : > { %1908 = vmatprep.subr.bf16.mxu1 %v1907_v11 }
 0x633   : > { %1910 = vmatpush1.bf16.msra.mxu1 %v1909_v12 }
 0x634   : > { %v957_v18 = vpop.permute.xlu1 %956 }
 0x635   : > { %v961_v19 = vsel %vm960_vm11, %v953_v10, %v957_v18  ;;  %v963_v20 = vsel %vm960_vm11, %v957_v18, %v953_v10 }
 0x636   : > { %v965_v23 = vmul.f32 %v961_v19, %v2719_v29  ;;  %v966_v27 = vmul.f32 %v963_v20, %v2722_v32 }
 0x638   : > { %v974_v2 = vpop.permute.xlu1 %973  ;;  %v1911_v5 = vpack.c.bf16 %v968_v22, %v966_v27  ;;  %v1913_v31 = vpack.c.bf16 %v967_v21, %v965_v23 }
 0x63a   : > { %1912 = vmatprep.subr.bf16.mxu1 %v1911_v5 }
 0x63b   : > { %1914 = vmatpush1.bf16.msra.mxu1 %v1913_v31 }
 0x63c   : > { %v978_v40 = vpop.permute.xlu1 %977 }
 0x63d   : > { %v982_v42 = vsel %vm981_vm12, %v974_v2, %v978_v40  ;;  %v984_v43 = vsel %vm981_vm12, %v978_v40, %v974_v2 }
 0x63e   : > { %v986_v47 = vmul.f32 %v982_v42, %v2741_v1  ;;  %v987_v48 = vmul.f32 %v984_v43, %v2744_v3 }
 0x640   : > { %v995_v50 = vpop.permute.xlu1 %994  ;;  %v1915_v51 = vpack.c.bf16 %v989_v25, %v987_v48  ;;  %v1917_v52 = vpack.c.bf16 %v988_v24, %v986_v47 }
 0x642   : > { %1916 = vmatprep.subr.bf16.mxu1 %v1915_v51 }
 0x643   : > { %1918 = vmatpush1.bf16.msra.mxu1 %v1917_v52 }
 0x644   : > { %v999_v61 = vpop.permute.xlu1 %998 }
 0x645   : > { %v1003_v62 = vsel %vm1002_vm13, %v995_v50, %v999_v61  ;;  %v1005_v63 = vsel %vm1002_vm13, %v999_v61, %v995_v50 }
 0x646   : > { %v1007_v4 = vmul.f32 %v1003_v62, %v2763_v53  ;;  %v1008_v30 = vmul.f32 %v1005_v63, %v2766_v56 }
 0x648   : > { %v1919_v33 = vpack.c.bf16 %v1010_v41, %v1008_v30  ;;  %v1921_v6 = vpack.c.bf16 %v1009_v26, %v1007_v4 }
 0x64a   : > { %1920 = vmatprep.subr.bf16.mxu1 %v1919_v33 }
 0x64b   : > { %1922 = vmatpush1.bf16.msra.mxu1 %v1921_v6 }
 0x64e   : > { %1126 = vmatmul.mubr.f32.vlgmr.msra.gmra.mrb[0].mxu1 %v1051_v7 }
 0x64f   : > { %1693 = vmatprep.mubr.f32.mxu1 %v2227_v0 }
 0x655   : > { %v1056_v8 = vpop.permute.xlu1 %1055 }
 0x721   : > { %v1127_v9 = vpop.f32.mrb[0].mxu1 }
 0x722   : > { %v1128_v10 = vadd.f32 %v1127_v9, %v1056_v8  ;;  %v1129_v11 = vpop.f32.mrb[1].mxu1 }
 0x723   : > { %v1130_v12 = vadd.f32 %v1129_v11, %v1056_v8 }
 0x724   : > { %v2784_v13 = vmax.f32 %v1128_v10, 0.0 }
 0x725   : > { %v1133_v14 = vmax.f32 %v1130_v12, 0.0 }
 0x726   : > { %1138 = vrot.lane.b32.xlu0 %v2784_v13, %s2231_s15 }
 0x727   : > { %1140 = vrot.lane.b32.xlu1 %v1133_v14, %s2231_s15 }
 0x72a   : > { %1148 = vrot.lane.b32.xlu0 %v2784_v13, %s2232_s21 }
 0x72b   : > { %1150 = vrot.lane.b32.xlu1 %v1133_v14, %s2232_s21 }
 0x72e   : > { %1158 = vrot.lane.b32.xlu0 %v2784_v13, %s2233_s26 }
 0x72f   : > { %1160 = vrot.lane.b32.xlu1 %v1133_v14, %s2233_s26 }
 0x732   : > { %1168 = vrot.lane.b32.xlu0 %v2784_v13, %s2234_s11 }
 0x733   : > { %1170 = vrot.lane.b32.xlu1 %v1133_v14, %s2234_s11 }
 0x736   : > { %1180 = vrot.lane.b32.xlu0 %v2784_v13, %s2235_s18 }
 0x737   : > { %1182 = vrot.lane.b32.xlu1 %v1133_v14, %s2235_s18 }
 0x73a   : > { %1190 = vrot.lane.b32.xlu0 %v2784_v13, %s2236_s29 }
 0x73b   : > { %1192 = vrot.lane.b32.xlu1 %v1133_v14, %s2236_s29 }
 0x73e   : > { %1200 = vrot.lane.b32.xlu0 %v2784_v13, %s2237_s27 }
 0x73f   : > { %1202 = vrot.lane.b32.xlu1 %v1133_v14, %s2237_s27 }
 0x742   : > { %1210 = vrot.lane.b32.xlu0 %v2784_v13, %s2238_s19 }
 0x743   : > { %1212 = vrot.lane.b32.xlu1 %v1133_v14, %s2238_s19 }
 0x746   : > { %1241 = vperm.xlu0 %2054, %v402_v15  }
 0x798   : > { %v1139_v18 = vpop.permute.xlu0 %1138 }
 0x799   : > { %v1141_v19 = vpop.permute.xlu1 %1140 }
 0x79a   : > { %v1142_v20 = vsel %vm851_vm6, %v1139_v18, %v1141_v19  ;;  %v1143_v21 = vsel %vm851_vm6, %v1141_v19, %v1139_v18 }
 0x79b   : > { %v1144_v2 = vmul.f32 %v1143_v21, %v2605_v44  ;;  %v1145_v5 = vmul.f32 %v1142_v20, %v2608_v46 }
 0x79c   : > { %v1149_v22 = vpop.permute.xlu0 %1148 }
 0x79d   : > { %v1151_v23 = vpop.permute.xlu1 %1150 }
 0x79e   : > { %v1152_v27 = vsel %vm872_vm7, %v1149_v22, %v1151_v23  ;;  %v1153_v28 = vsel %vm872_vm7, %v1151_v23, %v1149_v22 }
 0x79f   : > { %v1154_v31 = vmul.f32 %v1153_v28, %v2627_v59  ;;  %v1155_v34 = vmul.f32 %v1152_v27, %v2630_v60 }
 0x7a0   : > { %v1159_v37 = vpop.permute.xlu0 %1158 }
 0x7a1   : > { %v1925_v39 = vpack.c.bf16 %v1154_v31, %v1144_v2  ;;  %v1161_v40 = vpop.permute.xlu1 %1160  ;;  %v1923_v42 = vpack.c.bf16 %v1155_v34, %v1145_v5  ;;  %v1238_v31 = vld [vmem:[#allocation7] sm:$0xff] }
 0x7a2   : > { %v1162_v43 = vsel %vm893_vm8, %v1159_v37, %v1161_v40  ;;  %v1163_v24 = vsel %vm893_vm8, %v1161_v40, %v1159_v37 }
 0x7a3   : > { %1924 = vmatprep.subr.bf16.mxu0 %v1923_v42  ;;  %v1164_v45 = vmul.f32 %v1163_v24, %v2649_v16  ;;  %v1165_v50 = vmul.f32 %v1162_v43, %v2652_v17 }
 0x7a4   : > { %1926 = vmatpush1.bf16.msra.mxu0 %v1925_v39  ;;  %v1169_v25 = vpop.permute.xlu0 %1168 }
 0x7a5   : > { %v1171_v47 = vpop.permute.xlu1 %1170 }
 0x7a6   : > { %v1172_v48 = vsel %vm914_vm9, %v1169_v25, %v1171_v47  ;;  %v1173_v49 = vsel %vm914_vm9, %v1171_v47, %v1169_v25  ;;  %v403_v25 = vld [vmem:[%s3108_s5 + $0x38] sm:$0xff] }
 0x7a7   : > { %v1174_v51 = vmul.f32 %v1173_v49, %v2671_v35  ;;  %v1175_v52 = vmul.f32 %v1172_v48, %v2674_v36 }
 0x7a8   : > { %v1181_v57 = vpop.permute.xlu0 %1180 }
 0x7a9   : > { %v1929_v58 = vpack.c.bf16 %v1174_v51, %v1164_v45  ;;  %v1183_v61 = vpop.permute.xlu1 %1182  ;;  %v1927_v62 = vpack.c.bf16 %v1175_v52, %v1165_v50 }
 0x7aa   : > { %v1184_v63 = vsel %vm939_vm10, %v1181_v57, %v1183_v61  ;;  %v1185_v26 = vsel %vm939_vm10, %v1183_v61, %v1181_v57 }
 0x7ab   : > { %v1186_v41 = vmul.f32 %v1184_v63, %v2693_v54  ;;  %v1187_v4 = vmul.f32 %v1185_v26, %v2696_v55  ;;  %1928 = vmatprep.subr.bf16.mxu0 %v1927_v62 }
 0x7ac   : > { %1930 = vmatpush1.bf16.msra.mxu0 %v1929_v58  ;;  %v1191_v30 = vpop.permute.xlu0 %1190 }
 0x7ad   : > { %v1933_v33 = vpack.c.bf16 %v1186_v41, %v2784_v13  ;;  %v1193_v6 = vpop.permute.xlu1 %1192  ;;  %v1931_v7 = vpack.c.bf16 %v1187_v4, %v1133_v14 }
 0x7ae   : > { %v1194_v8 = vsel %vm960_vm11, %v1191_v30, %v1193_v6  ;;  %v1195_v9 = vsel %vm960_vm11, %v1193_v6, %v1191_v30 }
 0x7af   : > { %1932 = vmatprep.subr.bf16.mxu0 %v1931_v7  ;;  %v1196_v13 = vmul.f32 %v1194_v8, %v2719_v29  ;;  %v1197_v14 = vmul.f32 %v1195_v9, %v2722_v32 }
 0x7b0   : > { %1934 = vmatpush1.bf16.msra.mxu0 %v1933_v33  ;;  %v1201_v10 = vpop.permute.xlu0 %1200 }
 0x7b1   : > { %v1203_v11 = vpop.permute.xlu1 %1202 }
 0x7b2   : > { %v1204_v12 = vsel %vm981_vm12, %v1201_v10, %v1203_v11  ;;  %v1205_v15 = vsel %vm981_vm12, %v1203_v11, %v1201_v10 }
 0x7b3   : > { %v1206_v18 = vmul.f32 %v1204_v12, %v2741_v1  ;;  %v1207_v19 = vmul.f32 %v1205_v15, %v2744_v3 }
 0x7b4   : > { %v1211_v20 = vpop.permute.xlu0 %1210 }
 0x7b5   : > { %v1937_v21 = vpack.c.bf16 %v1206_v18, %v1196_v13  ;;  %v1213_v22 = vpop.permute.xlu1 %1212  ;;  %v1935_v23 = vpack.c.bf16 %v1207_v19, %v1197_v14 }
 0x7b6   : > { %v1215_v27 = vsel %vm1002_vm13, %v1213_v22, %v1211_v20  ;;  %v1214_v28 = vsel %vm1002_vm13, %v1211_v20, %v1213_v22 }
 0x7b7   : > { %v1217_v2 = vmul.f32 %v1215_v27, %v2766_v56  ;;  %1936 = vmatprep.subr.bf16.mxu0 %v1935_v23  ;;  %v1216_v5 = vmul.f32 %v1214_v28, %v2763_v53 }
 0x7b8   : > { %1938 = vmatpush1.bf16.msra.mxu0 %v1937_v21 }
 0x7b9   : > { %1264 = vmatprep.subr.mxu0 %v1217_v2 }
 0x7bc   : > { %1265 = vmatpush1.msra.mxu0 %v1216_v5 }
 0x7bd   : > { %1851 = vmatmul.mubr.msk.f32.vlgmr.msra.gmra.mrb[6].mxu0 %vm1244_vm14, %v1238_v31 }
 0x7be   : > { %1498 = vmatprep.mubr.f32.mxu0 %v2227_v0 }
 0x7c5   : > { %v1242_v34 = vpop.permute.xlu0 %1241 }
 0x890   : > { %v1314_v37 = vpop.f32.mrb[6].mxu0 }
 0x891   : > { %v1315_v39 = vadd.f32 %v1314_v37, %v1242_v34  ;;  %v1316_v40 = vpop.f32.mrb[7].mxu0 }
 0x892   : > { %v1317_v42 = vadd.f32 %v1316_v40, %v1242_v34 }
 0x893   : > { %v2864_v43 = vmax.f32 %v1315_v39, 0.0 }
 0x894   : > { %v1320_v24 = vmax.f32 %v1317_v42, 0.0 }
 0x895   : > { %1325 = vrot.lane.b32.xlu1 %v2864_v43, %s2231_s15 }
 0x896   : > { %1327 = vrot.lane.b32.xlu0 %v1320_v24, %s2231_s15 }
 0x899   : > { %1335 = vrot.lane.b32.xlu1 %v2864_v43, %s2232_s21 }
 0x89a   : > { %1337 = vrot.lane.b32.xlu0 %v1320_v24, %s2232_s21 }
 0x89d   : > { %1345 = vrot.lane.b32.xlu1 %v2864_v43, %s2233_s26 }
 0x89e   : > { %1347 = vrot.lane.b32.xlu0 %v1320_v24, %s2233_s26 }
 0x8a1   : > { %1355 = vrot.lane.b32.xlu1 %v2864_v43, %s2234_s11 }
 0x8a2   : > { %1357 = vrot.lane.b32.xlu0 %v1320_v24, %s2234_s11 }
 0x8a5   : > { %1367 = vrot.lane.b32.xlu1 %v2864_v43, %s2235_s18 }
 0x8a6   : > { %1369 = vrot.lane.b32.xlu0 %v1320_v24, %s2235_s18 }
 0x8a9   : > { %1377 = vrot.lane.b32.xlu1 %v2864_v43, %s2236_s29 }
 0x8aa   : > { %1379 = vrot.lane.b32.xlu0 %v1320_v24, %s2236_s29 }
 0x8ad   : > { %1387 = vrot.lane.b32.xlu1 %v2864_v43, %s2237_s27 }
 0x8ae   : > { %1389 = vrot.lane.b32.xlu0 %v1320_v24, %s2237_s27 }
 0x8b1   : > { %1397 = vrot.lane.b32.xlu1 %v2864_v43, %s2238_s19 }
 0x8b2   : > { %1399 = vrot.lane.b32.xlu0 %v1320_v24, %s2238_s19 }
 0x8b5   : > { %1428 = vperm.xlu1 %2055, %v403_v25  }
 0x907   : > { %v1326_v47 = vpop.permute.xlu1 %1325 }
 0x908   : > { %v1328_v48 = vpop.permute.xlu0 %1327 }
 0x909   : > { %v1329_v49 = vsel %vm851_vm6, %v1326_v47, %v1328_v48  ;;  %v1330_v45 = vsel %vm851_vm6, %v1328_v48, %v1326_v47 }
 0x90a   : > { %v1331_v58 = vmul.f32 %v1330_v45, %v2605_v44  ;;  %v1332_v61 = vmul.f32 %v1329_v49, %v2608_v46 }
 0x90b   : > { %v1336_v50 = vpop.permute.xlu1 %1335 }
 0x90c   : > { %v1338_v51 = vpop.permute.xlu0 %1337 }
 0x90d   : > { %v1339_v52 = vsel %vm872_vm7, %v1336_v50, %v1338_v51  ;;  %v1340_v57 = vsel %vm872_vm7, %v1338_v51, %v1336_v50 }
 0x90e   : > { %v1341_v62 = vmul.f32 %v1340_v57, %v2627_v59  ;;  %v1342_v63 = vmul.f32 %v1339_v52, %v2630_v60 }
 0x90f   : > { %v1346_v26 = vpop.permute.xlu1 %1345 }
 0x910   : > { %v1941_v41 = vpack.c.bf16 %v1341_v62, %v1331_v58  ;;  %v1348_v4 = vpop.permute.xlu0 %1347  ;;  %v1939_v30 = vpack.c.bf16 %v1342_v63, %v1332_v61  ;;  %v1425_v62 = vld [vmem:[#allocation9] sm:$0xff] }
 0x911   : > { %v1349_v33 = vsel %vm893_vm8, %v1346_v26, %v1348_v4  ;;  %v1350_v6 = vsel %vm893_vm8, %v1348_v4, %v1346_v26 }
 0x912   : > { %1940 = vmatprep.subr.bf16.mxu0 %v1939_v30  ;;  %v1351_v11 = vmul.f32 %v1350_v6, %v2649_v16  ;;  %v1352_v12 = vmul.f32 %v1349_v33, %v2652_v17 }
 0x913   : > { %1942 = vmatpush1.bf16.msra.mxu0 %v1941_v41  ;;  %v1356_v7 = vpop.permute.xlu1 %1355 }
 0x914   : > { %v1358_v8 = vpop.permute.xlu0 %1357 }
 0x915   : > { %v1359_v9 = vsel %vm914_vm9, %v1356_v7, %v1358_v8  ;;  %v1360_v10 = vsel %vm914_vm9, %v1358_v8, %v1356_v7  ;;  %v404_v7 = vld [vmem:[%s3108_s5 + $0x40] sm:$0xff]  ;;  %v405_v8 = vld [vmem:[%s3108_s5 + $0x48] sm:$0xff] }
 0x916   : > { %v1361_v15 = vmul.f32 %v1360_v10, %v2671_v35  ;;  %v1362_v13 = vmul.f32 %v1359_v9, %v2674_v36 }
 0x917   : > { %v1368_v14 = vpop.permute.xlu1 %1367 }
 0x918   : > { %v1945_v18 = vpack.c.bf16 %v1361_v15, %v1351_v11  ;;  %v1370_v19 = vpop.permute.xlu0 %1369  ;;  %v1943_v20 = vpack.c.bf16 %v1362_v13, %v1352_v12 }
 0x919   : > { %v1371_v21 = vsel %vm939_vm10, %v1368_v14, %v1370_v19  ;;  %v1372_v22 = vsel %vm939_vm10, %v1370_v19, %v1368_v14 }
 0x91a   : > { %v1373_v23 = vmul.f32 %v1371_v21, %v2693_v54  ;;  %v1374_v27 = vmul.f32 %v1372_v22, %v2696_v55  ;;  %1944 = vmatprep.subr.bf16.mxu0 %v1943_v20 }
 0x91b   : > { %1946 = vmatpush1.bf16.msra.mxu0 %v1945_v18  ;;  %v1378_v28 = vpop.permute.xlu1 %1377 }
 0x91c   : > { %v1949_v2 = vpack.c.bf16 %v1373_v23, %v2864_v43  ;;  %v1380_v5 = vpop.permute.xlu0 %1379  ;;  %v1947_v31 = vpack.c.bf16 %v1374_v27, %v1320_v24 }
 0x91d   : > { %v1381_v34 = vsel %vm960_vm11, %v1378_v28, %v1380_v5  ;;  %v1382_v37 = vsel %vm960_vm11, %v1380_v5, %v1378_v28 }
 0x91e   : > { %1948 = vmatprep.subr.bf16.mxu0 %v1947_v31  ;;  %v1383_v43 = vmul.f32 %v1381_v34, %v2719_v29  ;;  %v1384_v24 = vmul.f32 %v1382_v37, %v2722_v32 }
 0x91f   : > { %1950 = vmatpush1.bf16.msra.mxu0 %v1949_v2  ;;  %v1388_v39 = vpop.permute.xlu1 %1387 }
 0x920   : > { %v1390_v40 = vpop.permute.xlu0 %1389 }
 0x921   : > { %v1391_v42 = vsel %vm981_vm12, %v1388_v39, %v1390_v40  ;;  %v1392_v25 = vsel %vm981_vm12, %v1390_v40, %v1388_v39 }
 0x922   : > { %v1393_v47 = vmul.f32 %v1391_v42, %v2741_v1  ;;  %v1394_v48 = vmul.f32 %v1392_v25, %v2744_v3 }
 0x923   : > { %v1398_v49 = vpop.permute.xlu1 %1397 }
 0x924   : > { %v1953_v45 = vpack.c.bf16 %v1393_v47, %v1383_v43  ;;  %v1400_v50 = vpop.permute.xlu0 %1399  ;;  %v1951_v51 = vpack.c.bf16 %v1394_v48, %v1384_v24 }
 0x925   : > { %v1402_v52 = vsel %vm1002_vm13, %v1400_v50, %v1398_v49  ;;  %v1401_v57 = vsel %vm1002_vm13, %v1398_v49, %v1400_v50 }
 0x926   : > { %v1404_v58 = vmul.f32 %v1402_v52, %v2766_v56  ;;  %1952 = vmatprep.subr.bf16.mxu0 %v1951_v51  ;;  %v1403_v61 = vmul.f32 %v1401_v57, %v2763_v53 }
 0x927   : > { %1954 = vmatpush1.bf16.msra.mxu0 %v1953_v45 }
 0x928   : > { %1450 = vmatprep.subr.mxu0 %v1404_v58 }
 0x92b   : > { %1451 = vmatpush1.msra.mxu0 %v1403_v61 }
 0x92c   : > { %1852 = vmatmul.mubr.msk.f32.vlgmr.msra.gmra.mrb[8].mxu0 %vm1244_vm14, %v1425_v62 }
 0x934   : > { %v1429_v63 = vpop.permute.xlu1 %1428 }
 0x9ff   : > { %v1500_v26 = vpop.f32.mrb[8].mxu0 }
 0xa00   : > { %v1501_v41 = vadd.f32 %v1500_v26, %v1429_v63  ;;  %v1502_v4 = vpop.f32.mrb[9].mxu0 }
 0xa01   : > { %v1503_v30 = vadd.f32 %v1502_v4, %v1429_v63 }
 0xa02   : > { %v2943_v33 = vmax.f32 %v1501_v41, 0.0 }
 0xa03   : > { %v2945_v6 = vmax.f32 %v1503_v30, 0.0 }
 0xa04   : > { %1511 = vrot.lane.b32.xlu0 %v2943_v33, %s2231_s15 }
 0xa05   : > { %1513 = vrot.lane.b32.xlu1 %v2945_v6, %s2231_s15 }
 0xa08   : > { %1521 = vrot.lane.b32.xlu0 %v2943_v33, %s2232_s21 }
 0xa09   : > { %1523 = vrot.lane.b32.xlu1 %v2945_v6, %s2232_s21 }
 0xa0c   : > { %1531 = vrot.lane.b32.xlu0 %v2943_v33, %s2233_s26 }
 0xa0d   : > { %1533 = vrot.lane.b32.xlu1 %v2945_v6, %s2233_s26 }
 0xa10   : > { %1541 = vrot.lane.b32.xlu0 %v2943_v33, %s2234_s11 }
 0xa11   : > { %1543 = vrot.lane.b32.xlu1 %v2945_v6, %s2234_s11  ;;  %s3057_s11 = scalar_lea.hbm %s3113_s10, %s1861_s30 }
 0xa14   : > { %1553 = vrot.lane.b32.xlu0 %v2943_v33, %s2235_s18 }
 0xa15   : > { %1555 = vrot.lane.b32.xlu1 %v2945_v6, %s2235_s18  ;;  %s2152_s18 = scalar_lea.vmem %s3050_s25, 512 }
 0xa16   : > { %p2153_p12 = scmp.ne.s32.totalorder %s3050_s25, %s2152_s18 }
 0xa18   : > { %1563 = vrot.lane.b32.xlu0 %v2943_v33, %s2236_s29  ;;  %p2154_p2 = pnand %p2153_p12, %p3135_p10 }
 0xa19   : > { %1565 = vrot.lane.b32.xlu1 %v2945_v6, %s2236_s29  ;;  %s2239_s29 = smov [#allocation10]  }
 0xa1a   : > { %p2155_p3 = pneg %p2154_p2 }
 0xa1c   : > { %1573 = vrot.lane.b32.xlu0 %v2943_v33, %s2237_s27 }
 0xa1d   : > { %1575 = vrot.lane.b32.xlu1 %v2945_v6, %s2237_s27  ;;  %s2156_s27 = sshll.u32 %s2239_s29, 4  ;;  %s2157_s27 = int_to_ptr.vmem [resolvable:$false] %s2156_s27 }
 0xa1e   : > { %p2159_p4 = scmp.lt.s32.totalorder %s3050_s25, %s2157_s27 }
 0xa20   : > { %1583 = vrot.lane.b32.xlu0 %v2943_v33, %s2238_s19 }
 0xa21   : > { %1585 = vrot.lane.b32.xlu1 %v2945_v6, %s2238_s19 }
 0xa24   : > { %1615 = vperm.xlu0 %2054, %v404_v7  }
 0xa25   : > { %1620 = vperm.xlu1 %2055, %v405_v8  }
 0xa76   : > { %v1512_v9 = vpop.permute.xlu0 %1511 }
 0xa77   : > { %v1514_v10 = vpop.permute.xlu1 %1513 }
 0xa78   : > { %v1515_v11 = vsel %vm851_vm6, %v1512_v9, %v1514_v10  ;;  %v1516_v12 = vsel %vm851_vm6, %v1514_v10, %v1512_v9 }
 0xa79   : > { %v1517_v19 = vmul.f32 %v1516_v12, %v2605_v44  ;;  %v1518_v20 = vmul.f32 %v1515_v11, %v2608_v46  ;;  %v2064_v12 = vld [vmem:[%s2447_s24] sm:$0xff] }
 0xa7a   : > { %v1522_v15 = vpop.permute.xlu0 %1521 }
 0xa7b   : > { %v1524_v13 = vpop.permute.xlu1 %1523 }
 0xa7c   : > { %v1525_v14 = vsel %vm872_vm7, %v1522_v15, %v1524_v13  ;;  %v1526_v18 = vsel %vm872_vm7, %v1524_v13, %v1522_v15 }
 0xa7d   : > { %v1527_v21 = vmul.f32 %v1526_v18, %v2627_v59  ;;  %v1528_v22 = vmul.f32 %v1525_v14, %v2630_v60  ;;  %v2065_v18 = vld [vmem:[%s2447_s24 + $0x8] sm:$0xff] }
 0xa7e   : > { %v1532_v23 = vpop.permute.xlu0 %1531 }
 0xa7f   : > { %v1957_v27 = vpack.c.bf16 %v1527_v21, %v1517_v19  ;;  %v1534_v28 = vpop.permute.xlu1 %1533  ;;  %v1955_v2 = vpack.c.bf16 %v1528_v22, %v1518_v20 }
 0xa80   : > { %v1535_v5 = vsel %vm893_vm8, %v1532_v23, %v1534_v28  ;;  %v1536_v31 = vsel %vm893_vm8, %v1534_v28, %v1532_v23  ;;  %v2066_v23 = vld [vmem:[%s2447_s24 + $0x10] sm:$0xff]  ;;  %v2067_v28 = vld [vmem:[%s2447_s24 + $0x18] sm:$0xff]  ;;  %s2158_s24 = scalar_lea.vmem %s2157_s27, 1024 }
 0xa81   : > { %1956 = vmatprep.subr.bf16.mxu1 %v1955_v2  ;;  %v1537_v60 = vmul.f32 %v1536_v31, %v2649_v16  ;;  %v1538_v37 = vmul.f32 %v1535_v5, %v2652_v17  ;;  %p2160_p7 = scmp.lt.s32.totalorder %s2158_s24, %s2152_s18 }
 0xa82   : > { %1958 = vmatpush1.bf16.msra.mxu1 %v1957_v27  ;;  %v1542_v34 = vpop.permute.xlu0 %1541 }
 0xa83   : > { %v1544_v44 = vpop.permute.xlu1 %1543  ;;  %p2161_p8 = por %p2160_p7, %p2159_p4 }
 0xa84   : > { %v1545_v46 = vsel %vm914_vm9, %v1542_v34, %v1544_v44  ;;  %v1546_v59 = vsel %vm914_vm9, %v1544_v44, %v1542_v34 }
 0xa85   : > { %v1547_v39 = vmul.f32 %v1546_v59, %v2671_v35  ;;  %v1548_v40 = vmul.f32 %v1545_v46, %v2674_v36  ;;  %p2162_p11 = pnand %p2161_p8, %p2155_p3 }
 0xa86   : > { %v1554_v42 = vpop.permute.xlu0 %1553 }
 0xa87   : > { %v1961_v25 = vpack.c.bf16 %v1547_v39, %v1537_v60  ;;  %v1556_v43 = vpop.permute.xlu1 %1555  ;;  %v1959_v24 = vpack.c.bf16 %v1548_v40, %v1538_v37 }
 0xa88   : > { %v1557_v47 = vsel %vm939_vm10, %v1554_v42, %v1556_v43  ;;  %v1558_v48 = vsel %vm939_vm10, %v1556_v43, %v1554_v42 }
 0xa89   : > { %v1559_v49 = vmul.f32 %v1557_v47, %v2693_v54  ;;  %v1560_v16 = vmul.f32 %v1558_v48, %v2696_v55  ;;  %1960 = vmatprep.subr.bf16.mxu1 %v1959_v24 }
 0xa8a   : > { %1962 = vmatpush1.bf16.msra.mxu1 %v1961_v25  ;;  %v1564_v17 = vpop.permute.xlu0 %1563 }
 0xa8b   : > { %v1965_v35 = vpack.c.bf16 %v1559_v49, %v2943_v33  ;;  %v1566_v36 = vpop.permute.xlu1 %1565  ;;  %v1963_v45 = vpack.c.bf16 %v1560_v16, %v2945_v6 }
 0xa8c   : > { %v1567_v50 = vsel %vm960_vm11, %v1564_v17, %v1566_v36  ;;  %v1568_v51 = vsel %vm960_vm11, %v1566_v36, %v1564_v17 }
 0xa8d   : > { %1964 = vmatprep.subr.bf16.mxu1 %v1963_v45  ;;  %v1569_v58 = vmul.f32 %v1567_v50, %v2719_v29  ;;  %v1570_v61 = vmul.f32 %v1568_v51, %v2722_v32 }
 0xa8e   : > { %1966 = vmatpush1.bf16.msra.mxu1 %v1965_v35  ;;  %v1574_v52 = vpop.permute.xlu0 %1573 }
 0xa8f   : > { %v1576_v54 = vpop.permute.xlu1 %1575 }
 0xa90   : > { %v1577_v55 = vsel %vm981_vm12, %v1574_v52, %v1576_v54  ;;  %v1578_v57 = vsel %vm981_vm12, %v1576_v54, %v1574_v52 }
 0xa91   : > { %v1579_v62 = vmul.f32 %v1577_v55, %v2741_v1  ;;  %v1580_v63 = vmul.f32 %v1578_v57, %v2744_v3  ;;  %v1611_v1 = vld [vmem:[%s3112_s9] sm:$0xff] }
 0xa92   : > { %v1584_v26 = vpop.permute.xlu0 %1583 }
 0xa93   : > { %v1969_v41 = vpack.c.bf16 %v1579_v62, %v1569_v58  ;;  %v1586_v4 = vpop.permute.xlu1 %1585  ;;  %v1967_v30 = vpack.c.bf16 %v1580_v63, %v1570_v61 }
 0xa94   : > { %v1588_v33 = vsel %vm1002_vm13, %v1586_v4, %v1584_v26  ;;  %v1587_v6 = vsel %vm1002_vm13, %v1584_v26, %v1586_v4 }
 0xa95   : > { %v1590_v29 = vmul.f32 %v1588_v33, %v2766_v56  ;;  %1968 = vmatprep.subr.bf16.mxu1 %v1967_v30  ;;  %v1589_v32 = vmul.f32 %v1587_v6, %v2763_v53 }
 0xa96   : > { %1970 = vmatpush1.bf16.msra.mxu1 %v1969_v41 }
 0xa97   : > { %1645 = vmatprep.subr.mxu1 %v1590_v29 }
 0xa9a   : > { %1646 = vmatpush1.msra.mxu1 %v1589_v32 }
 0xa9b   : > { %1853 = vmatmul.mubr.msk.f32.vlgmr.msra.gmra.mrb[2].mxu1 %vm1244_vm14, %v1611_v1 }
 0xa9c   : > { %1699 = vmatprep.mubr.f32.mxu1 %v2227_v0 }
 0xa9f   : > { %1854 = vmatmul.mubr.msk.f32.gmra.mrb[4].mxu1 %vm1244_vm14, %v1612_v38 }
 0xaa3   : > { %v1616_v3 = vpop.permute.xlu0 %1615 }
 0xaa4   : > { %v1621_v10 = vpop.permute.xlu1 %1620 }
 0xb6e   : > { %v1695_v53 = vpop.f32.mrb[2].mxu1 }
 0xb6f   : > { %v1696_v56 = vadd.f32 %v1695_v53, %v1616_v3  ;;  %v1697_v7 = vpop.f32.mrb[3].mxu1 }
 0xb70   : > { %v1698_v8 = vadd.f32 %v1697_v7, %v1616_v3 }
 0xb71   : > { %v1706_v9 = vmax.f32 %v1696_v56, 0.0 }
 0xb72   : > { %v1707_v11 = vmax.f32 %v1698_v8, 0.0  ;;  %v1701_v0 = vpop.f32.mrb[4].mxu1 }
 0xb73   : > { %v1710_v15 = vadd.f32 %v2064_v12, %v1706_v9  ;;  %v1702_v13 = vadd.f32 %v1701_v0, %v1621_v10  ;;  %v1703_v14 = vpop.f32.mrb[5].mxu1 }
 0xb74   : > { %v1711_v19 = vadd.f32 %v2065_v18, %v1707_v11  ;;  %v1704_v20 = vadd.f32 %v1703_v14, %v1621_v10 }
 0xb75   : > { %1714 = vst [vmem:[%s390_s20] sm:$0xff] %v1710_v15  ;;  %v1708_v21 = vmax.f32 %v1702_v13, 0.0 }
 0xb76   : > { %1715 = vst [vmem:[%s390_s20 + $0x8] sm:$0xff] %v1711_v19  ;;  %v1709_v22 = vmax.f32 %v1704_v20, 0.0 }
 0xb77   : > { %v1712_v27 = vadd.f32 %v2066_v23, %v1708_v21 }
 0xb78   : > { %v1713_v2 = vadd.f32 %v2067_v28, %v1709_v22 }
 0xb79   : > { %1716 = vst [vmem:[%s390_s20 + $0x10] sm:$0xff] %v1712_v27 }
 0xb7a   : > { %1717 = vst [vmem:[%s390_s20 + $0x18] sm:$0xff] %v1713_v2 }
 0xb7b   : > { %2165 = shalt.err (!%p2162_p11)
}
 0xb7c   : > { %s2166_s19 = scalar_lea.hbm %s3057_s11, 512  ;;  %s2170_s22 = scalar_lea.hbm %s3113_s10, 1024 }
 0xb7d   : > { %p2167_p13 = scmp.ne.s32.totalorder %s3057_s11, %s2166_s19  ;;  %p2171_p6 = scmp.lt.u32.totalorder %s3057_s11, %s3113_s10 }
 0xb7e   : > { %p2172_p5 = scmp.lt.u32.totalorder %s2170_s22, %s2166_s19  ;;  %p2174_p12 = scmp.lt.u32.totalorder %s2166_s19, %s3057_s11 }
 0xb7f   : > { %p2168_p1 = pnand %p2167_p13, %p3135_p10 }
 0xb80   : > { %p2173_p9 = por %p2172_p5, %p2171_p6 }
 0xb81   : > { %p2169_p0 = pneg %p2168_p1 }
 0xb82   : > { %p2175_p2 = por %p2174_p12, %p2173_p9 }
 0xb84   : > { %p2176_p3 = pnand %p2175_p2, %p2169_p0 }
 0xb86   : > { %2179 = shalt.err (!%p2176_p3)
}
 0xb87   : > { %s2240_s15 = smov 256  }
 0xb88   : > { %1983 = dma.vmem_to_hbm [thread:$0]  (%p3135_p10), %s3050_s25, 512, %s3057_s11, %s3061_s17, %s2240_s15, %s2240_s15, %s2232_s21  }
 0xb89 PF: > { %s3136_s26 = sld [smem:[#allocation17_spill]]  ;;  %p2005_p4 = scmp.ge.s32.totalorder %s2222_s16, 2 }
 0xb8a   : > { %s1747_s18 = sand.u32 1, %s2210_s13  }
 0xb8b   : > { %s1748_s29 = scalar_lea.sflag [#allocation6], %s1747_s18 }
 0xb8f   : > { %p3137_p7 = scmp.ne.s32.totalorder %s3136_s26, 0 }
 0xb91   : > { %p1996_p8 = pnand %p2005_p4, %p3137_p7 }
 0xb93   : > { %2205 = dma.done.wait (!%p1996_p8), %s1748_s29, 512  }
 0xb94   : > { %2207 = vsyncadd (!%p1996_p8), %s1748_s29, 4294966784  ;;  %s3138_s16 = sld [smem:[#allocation15_spill]]  ;;  %s3139_s27 = sld [smem:[#allocation14_spill]] }
 0xb95   : > { %s3140_s15 = sld [smem:[#allocation16_spill]]  ;;  %s3141_s13 = smov %s2214_s14 }
 0xb9a   : > { %p22_p11 = scmp.ge.s32.totalorder %s3138_s16, 4   ;;  %s3142_s14 = smov %s3139_s27 }
 0xb9c   :  { %24 = sbr.rel (!%p22_p11) target bundleno = 5 (0x5), region = 115 }
 0xba3   :  { %1753 = vsyncpa [#allocation5], 1 }
 0xba4   :  { %1755 = vsyncpa [#allocation5 + $0x1], 1 }
 0xba5   :  { %1756 = vsyncpa [#allocation8], 1 }
 0xba6   :  { %1757 = vsyncpa [#allocation6], 1 }
 0xba7   :  { %1759 = vsyncpa [#allocation6 + $0x1], 1 }

</bundles_post_ra>
